<compile_context>
chip_gen: v5e
topology: v5e:2x2
jax: 0.10.0
libtpu: 0.0.40
codegen_flags: <defaults>
</compile_context>

<pallas_src>
import functools

import jax
import jax.numpy as jnp
from jax.experimental import pallas as pl
from jax.experimental.pallas import tpu as pltpu

BN_EPS = 1e-5  # nn.BatchNorm2d default eps


def _pick_tile_h(H, W):
    """Rows per stripe: aim for ~128 matmul rows (~16 f32 acc vregs at Cin=128) and divide H."""
    target = max(1, 128 // max(W, 1))
    t = min(H, target)
    while H % t:
        t -= 1
    return t


def _dwsep_kernel(K, tile_h, W, x_ref, dw_ref, pw_ref, b_ref, o_ref):
    """One row stripe of one image: depthwise KxK conv + 1x1 conv + folded BN + ReLU.

    x_ref  : (Hp, Wp, Cin)        zero-padded input image, bf16 (whole image, resident)
    dw_ref : (K*K, Cin)           depthwise filter taps, f32
    pw_ref : (Cin, Cout)          pointwise weight with BN scale folded in, bf16
    b_ref  : (1, Cout)            folded BN shift, f32
    o_ref  : (tile_h*W, Cout)     output rows of this stripe, f32
    """
    Cin = x_ref.shape[-1]
    s = pl.program_id(1)                                    # stripe index within the image
    base = pl.multiple_of(s * tile_h, tile_h)               # first padded-input row of the stripe

    # ---- depthwise KxK conv: shift-and-accumulate in registers (VPU, f32) ----------
    dw = dw_ref[...]                                        # (K*K, Cin), tiny
    acc = None
    for dy in range(K):                                     # static unroll over K*K taps
        # One row-band load per dy (outer dim of the ref -> plain address offset), upcast once.
        rows = x_ref[pl.ds(base + dy, tile_h), :, :].astype(jnp.float32)   # (tile_h, Wp, Cin)
        for dx in range(K):
            tap = dw[dy * K + dx].reshape(1, 1, Cin)        # per-channel tap
            contrib = rows[:, dx:dx + W, :] * tap           # shifted (tile_h, W, Cin) window
            acc = contrib if acc is None else acc + contrib # init folded into first tap

    # ---- pointwise 1x1 conv (MXU) + folded BN + ReLU --------------------------------
    y = acc.reshape(tile_h * W, Cin)                        # W%8==0, Cin%128==0 -> layout no-op
    z = jnp.dot(y.astype(pw_ref.dtype), pw_ref[...],        # bf16 operands, f32 accumulation
                preferred_element_type=jnp.float32)
    z = z + b_ref[...]                                      # folded BN shift
    o_ref[...] = jnp.maximum(z, 0.0).astype(o_ref.dtype)    # ReLU, lane-dense store


def depthwise_separable(x, dw_w, pw_w, gamma, beta, mean, var,
                        *, stride=1, mxu_dtype=jnp.bfloat16):
    """DepthwiseSeparable forward.  x: (N,H,W,Cin) f32, dw_w: (K,K,Cin),
    pw_w: (Cout,Cin), BN params: (Cout,).  Returns (N,H,W,Cout) f32."""
    # TODO(synk): stride > 1 depthwise conv (module default stride=1 is implemented).
    assert stride == 1, "only stride=1 is implemented"
    N, H, W, Cin = x.shape
    K = dw_w.shape[0]
    assert K % 2 == 1, "odd kernel_size expected (padding = kernel_size // 2)"
    Cout = pw_w.shape[0]
    pad = K // 2
    Hp, Wp = H + 2 * pad, W + 2 * pad

    # Fold BatchNorm (inference / running stats) into the pointwise conv.
    scale = gamma / jnp.sqrt(var + BN_EPS)                        # (Cout,)
    shift = beta - mean * scale                                   # (Cout,)
    pw_eff = (pw_w * scale[:, None]).T.astype(mxu_dtype)          # (Cin, Cout)
    bias = shift.reshape(1, Cout).astype(jnp.float32)

    # bf16 input DMA: halves HBM traffic and VMEM footprint of the dominant stream.
    xp = jnp.pad(x.astype(jnp.bfloat16),
                 ((0, 0), (pad, pad), (pad, pad), (0, 0)))        # zero pad (SAME, stride 1)
    # TODO(synk): at production H,W replace the host-side pad + whole-image input block with
    # halo'd row-stripe blocks (pl.Element H dim or manual make_async_copy) so per-step VMEM
    # is independent of the spatial size (matters on v7x's 64 MiB VMEM).
    dw_flat = dw_w.reshape(K * K, Cin).astype(jnp.float32)

    tile_h = _pick_tile_h(H, W)
    S = H // tile_h

    # Per-generation VMEM budget from the tiled block shapes (double-buffered, conservative).
    mxu_bytes = jnp.dtype(mxu_dtype).itemsize
    per_step = (2 * (Hp * Wp * Cin * 2 + tile_h * W * Cout * 4)
                + K * K * Cin * 4
                + Cin * Cout * mxu_bytes
                + Cout * 4)
    try:
        vmem_cap = pltpu.get_tpu_info().vmem_capacity_bytes       # 128 MiB v5e/v6e, 64 MiB v7x
    except Exception:
        vmem_cap = 64 * 2 ** 20
    vmem_limit = int(min(max(2 * per_step, 16 * 2 ** 20), vmem_cap // 2))

    kernel = functools.partial(_dwsep_kernel, K, tile_h, W)
    out = pl.pallas_call(
        kernel,
        out_shape=jax.ShapeDtypeStruct((N, H * W, Cout), jnp.float32),
        grid=(N, S),                                              # N*S steps (>=4 at the demo)
        in_specs=[
            pl.BlockSpec((None, Hp, Wp, Cin), lambda n, s: (n, 0, 0, 0)),  # padded image, bf16,
                                                                           #  resident across stripes
            pl.BlockSpec((K * K, Cin), lambda n, s: (0, 0)),               # depthwise taps
            pl.BlockSpec((Cin, Cout), lambda n, s: (0, 0)),                # folded pointwise weight
            pl.BlockSpec((1, Cout), lambda n, s: (0, 0)),                  # folded BN shift
        ],
        out_specs=pl.BlockSpec((None, tile_h * W, Cout), lambda n, s: (n, s, 0)),
        compiler_params=pltpu.CompilerParams(
            dimension_semantics=("parallel", "parallel"),
            vmem_limit_bytes=vmem_limit),
    )(xp, dw_flat, pw_eff, bias)
    return out.reshape(N, H, W, Cout)


def depthwise_separable_reference(x, dw_w, pw_w, gamma, beta, mean, var,
                                  mxu_dtype=jnp.bfloat16):
    """Plain-JAX/XLA reference with the same folded-BN + reduced-precision numerics
    as the kernel (bf16 input, f32 depthwise, bf16 MXU operands, f32 accumulation)."""
    N, H, W, Cin = x.shape
    K = dw_w.shape[0]
    xb = x.astype(jnp.bfloat16).astype(jnp.float32)   # matches the kernel's bf16 input DMA
    y = jax.lax.conv_general_dilated(
        xb, dw_w.reshape(K, K, 1, Cin).astype(jnp.float32),
        window_strides=(1, 1), padding="SAME",
        dimension_numbers=("NHWC", "HWIO", "NHWC"),
        feature_group_count=Cin,
        precision=jax.lax.Precision.HIGHEST)
    scale = gamma / jnp.sqrt(var + BN_EPS)
    shift = beta - mean * scale
    w_eff = (pw_w * scale[:, None]).T.astype(mxu_dtype)
    z = jnp.dot(y.reshape(-1, Cin).astype(mxu_dtype), w_eff,
                preferred_element_type=jnp.float32)
    z = z + shift[None, :].astype(jnp.float32)
    return jnp.maximum(z, 0.0).reshape(N, H, W, -1)


if __name__ == "__main__":
    key = jax.random.PRNGKey(0)
    # Small but lane-dense shapes: channels are a multiple of 128 (perf-review requirement).
    N, H, W, Cin, Cout, K = 2, 16, 16, 128, 128, 3

    ks = jax.random.split(key, 7)
    x = jax.random.normal(ks[0], (N, H, W, Cin), jnp.float32)
    dw_w = jax.random.normal(ks[1], (K, K, Cin), jnp.float32) * 0.3      # depthwise (C,1,K,K) weights
    pw_w = jax.random.normal(ks[2], (Cout, Cin), jnp.float32) / jnp.sqrt(Cin)
    gamma = jax.random.uniform(ks[3], (Cout,), jnp.float32, 0.5, 1.5)
    beta = jax.random.uniform(ks[4], (Cout,), jnp.float32, -0.1, 0.1)
    mean = jax.random.normal(ks[5], (Cout,), jnp.float32) * 0.1
    var = jax.random.uniform(ks[6], (Cout,), jnp.float32, 0.5, 1.5)

    fwd = jax.jit(depthwise_separable)
    out = jax.block_until_ready(fwd(x, dw_w, pw_w, gamma, beta, mean, var))

    ref = jax.block_until_ready(
        depthwise_separable_reference(x, dw_w, pw_w, gamma, beta, mean, var))

    assert out.shape == (N, H, W, Cout) and out.dtype == jnp.float32
    assert bool(jnp.all(jnp.isfinite(out)))
    max_err = float(jnp.max(jnp.abs(out - ref)))
    assert bool(jnp.allclose(out, ref, rtol=2e-2, atol=2e-2)), f"max|err|={max_err}"
    print("KERNEL_OK")
</pallas_src>

<mosaic_0001>
module attributes {stable_mosaic.version = 11 : i64} {
  func.func @_dwsep_kernel(%arg0: i32, %arg1: i32, %arg2: memref<1x18x18x128xbf16, #tpu.memory_space<vmem>>, %arg3: memref<9x128xf32, #tpu.memory_space<vmem>>, %arg4: memref<128x128xbf16, #tpu.memory_space<vmem>>, %arg5: memref<1x128xf32, #tpu.memory_space<vmem>>, %arg6: memref<1x128x128xf32, #tpu.memory_space<vmem>>) attributes {dimension_semantics = [#tpu.dimension_semantics<parallel>, #tpu.dimension_semantics<parallel>], iteration_bounds = array<i64: 2, 2>, scalar_prefetch = 0 : i64, scratch_operands = 0 : i64, tpu.core_type = #tpu.core_type<tc>, window_params = [{transform_indices = @transform_0, window_bounds = array<i64: 1, 18, 18, 128>}, {pipeline_mode = #tpu.pipeline_mode<synchronous>, transform_indices = @transform_1, window_bounds = array<i64: 9, 128>}, {pipeline_mode = #tpu.pipeline_mode<synchronous>, transform_indices = @transform_2, window_bounds = array<i64: 128, 128>}, {pipeline_mode = #tpu.pipeline_mode<synchronous>, transform_indices = @transform_3, window_bounds = array<i64: 1, 128>}, {transform_indices = @transform_4, window_bounds = array<i64: 1, 128, 128>}]} {
    %c8_i32 = arith.constant 8 : i32
    %0 = arith.muli %arg1, %c8_i32 : i32
    %1 = tpu.assume_multiple %0, 8 : i32
    %c0 = arith.constant 0 : index
    %c0_0 = arith.constant 0 : index
    %2 = vector.load %arg3[%c0, %c0_0] : memref<9x128xf32, #tpu.memory_space<vmem>>, vector<9x128xf32>
    %c0_i32 = arith.constant 0 : i32
    %3 = arith.addi %1, %c0_i32 : i32
    %c0_1 = arith.constant 0 : index
    %4 = arith.index_cast %3 : i32 to index
    %c0_2 = arith.constant 0 : index
    %c0_3 = arith.constant 0 : index
    %5 = vector.load %arg2[%c0_1, %4, %c0_2, %c0_3] : memref<1x18x18x128xbf16, #tpu.memory_space<vmem>>, vector<1x8x18x128xbf16>
    %6 = vector.shape_cast %5 : vector<1x8x18x128xbf16> to vector<8x18x128xbf16>
    %7 = arith.extf %6 : vector<8x18x128xbf16> to vector<8x18x128xf32>
    %8 = vector.extract_strided_slice %2 {offsets = [0, 0], sizes = [1, 128], strides = [1, 1]} : vector<9x128xf32> to vector<1x128xf32>
    %9 = vector.shape_cast %8 : vector<1x128xf32> to vector<128xf32>
    %10 = vector.shape_cast %9 : vector<128xf32> to vector<1x1x128xf32>
    %11 = vector.extract_strided_slice %7 {offsets = [0, 0, 0], sizes = [8, 16, 128], strides = [1, 1, 1]} : vector<8x18x128xf32> to vector<8x16x128xf32>
    %12 = vector.broadcast %10 : vector<1x1x128xf32> to vector<8x16x128xf32>
    %13 = arith.mulf %11, %12 : vector<8x16x128xf32>
    %14 = vector.extract_strided_slice %2 {offsets = [1, 0], sizes = [1, 128], strides = [1, 1]} : vector<9x128xf32> to vector<1x128xf32>
    %15 = vector.shape_cast %14 : vector<1x128xf32> to vector<128xf32>
    %16 = vector.shape_cast %15 : vector<128xf32> to vector<1x1x128xf32>
    %17 = vector.extract_strided_slice %7 {offsets = [0, 1, 0], sizes = [8, 16, 128], strides = [1, 1, 1]} : vector<8x18x128xf32> to vector<8x16x128xf32>
    %18 = vector.broadcast %16 : vector<1x1x128xf32> to vector<8x16x128xf32>
    %19 = arith.mulf %17, %18 : vector<8x16x128xf32>
    %20 = arith.addf %13, %19 : vector<8x16x128xf32>
    %21 = vector.extract_strided_slice %2 {offsets = [2, 0], sizes = [1, 128], strides = [1, 1]} : vector<9x128xf32> to vector<1x128xf32>
    %22 = vector.shape_cast %21 : vector<1x128xf32> to vector<128xf32>
    %23 = vector.shape_cast %22 : vector<128xf32> to vector<1x1x128xf32>
    %24 = vector.extract_strided_slice %7 {offsets = [0, 2, 0], sizes = [8, 16, 128], strides = [1, 1, 1]} : vector<8x18x128xf32> to vector<8x16x128xf32>
    %25 = vector.broadcast %23 : vector<1x1x128xf32> to vector<8x16x128xf32>
    %26 = arith.mulf %24, %25 : vector<8x16x128xf32>
    %27 = arith.addf %20, %26 : vector<8x16x128xf32>
    %c1_i32 = arith.constant 1 : i32
    %28 = arith.addi %1, %c1_i32 : i32
    %c0_4 = arith.constant 0 : index
    %29 = arith.index_cast %28 : i32 to index
    %c0_5 = arith.constant 0 : index
    %c0_6 = arith.constant 0 : index
    %30 = vector.load %arg2[%c0_4, %29, %c0_5, %c0_6] : memref<1x18x18x128xbf16, #tpu.memory_space<vmem>>, vector<1x8x18x128xbf16>
    %31 = vector.shape_cast %30 : vector<1x8x18x128xbf16> to vector<8x18x128xbf16>
    %32 = arith.extf %31 : vector<8x18x128xbf16> to vector<8x18x128xf32>
    %33 = vector.extract_strided_slice %2 {offsets = [3, 0], sizes = [1, 128], strides = [1, 1]} : vector<9x128xf32> to vector<1x128xf32>
    %34 = vector.shape_cast %33 : vector<1x128xf32> to vector<128xf32>
    %35 = vector.shape_cast %34 : vector<128xf32> to vector<1x1x128xf32>
    %36 = vector.extract_strided_slice %32 {offsets = [0, 0, 0], sizes = [8, 16, 128], strides = [1, 1, 1]} : vector<8x18x128xf32> to vector<8x16x128xf32>
    %37 = vector.broadcast %35 : vector<1x1x128xf32> to vector<8x16x128xf32>
    %38 = arith.mulf %36, %37 : vector<8x16x128xf32>
    %39 = arith.addf %27, %38 : vector<8x16x128xf32>
    %40 = vector.extract_strided_slice %2 {offsets = [4, 0], sizes = [1, 128], strides = [1, 1]} : vector<9x128xf32> to vector<1x128xf32>
    %41 = vector.shape_cast %40 : vector<1x128xf32> to vector<128xf32>
    %42 = vector.shape_cast %41 : vector<128xf32> to vector<1x1x128xf32>
    %43 = vector.extract_strided_slice %32 {offsets = [0, 1, 0], sizes = [8, 16, 128], strides = [1, 1, 1]} : vector<8x18x128xf32> to vector<8x16x128xf32>
    %44 = vector.broadcast %42 : vector<1x1x128xf32> to vector<8x16x128xf32>
    %45 = arith.mulf %43, %44 : vector<8x16x128xf32>
    %46 = arith.addf %39, %45 : vector<8x16x128xf32>
    %47 = vector.extract_strided_slice %2 {offsets = [5, 0], sizes = [1, 128], strides = [1, 1]} : vector<9x128xf32> to vector<1x128xf32>
    %48 = vector.shape_cast %47 : vector<1x128xf32> to vector<128xf32>
    %49 = vector.shape_cast %48 : vector<128xf32> to vector<1x1x128xf32>
    %50 = vector.extract_strided_slice %32 {offsets = [0, 2, 0], sizes = [8, 16, 128], strides = [1, 1, 1]} : vector<8x18x128xf32> to vector<8x16x128xf32>
    %51 = vector.broadcast %49 : vector<1x1x128xf32> to vector<8x16x128xf32>
    %52 = arith.mulf %50, %51 : vector<8x16x128xf32>
    %53 = arith.addf %46, %52 : vector<8x16x128xf32>
    %c2_i32 = arith.constant 2 : i32
    %54 = arith.addi %1, %c2_i32 : i32
    %c0_7 = arith.constant 0 : index
    %55 = arith.index_cast %54 : i32 to index
    %c0_8 = arith.constant 0 : index
    %c0_9 = arith.constant 0 : index
    %56 = vector.load %arg2[%c0_7, %55, %c0_8, %c0_9] : memref<1x18x18x128xbf16, #tpu.memory_space<vmem>>, vector<1x8x18x128xbf16>
    %57 = vector.shape_cast %56 : vector<1x8x18x128xbf16> to vector<8x18x128xbf16>
    %58 = arith.extf %57 : vector<8x18x128xbf16> to vector<8x18x128xf32>
    %59 = vector.extract_strided_slice %2 {offsets = [6, 0], sizes = [1, 128], strides = [1, 1]} : vector<9x128xf32> to vector<1x128xf32>
    %60 = vector.shape_cast %59 : vector<1x128xf32> to vector<128xf32>
    %61 = vector.shape_cast %60 : vector<128xf32> to vector<1x1x128xf32>
    %62 = vector.extract_strided_slice %58 {offsets = [0, 0, 0], sizes = [8, 16, 128], strides = [1, 1, 1]} : vector<8x18x128xf32> to vector<8x16x128xf32>
    %63 = vector.broadcast %61 : vector<1x1x128xf32> to vector<8x16x128xf32>
    %64 = arith.mulf %62, %63 : vector<8x16x128xf32>
    %65 = arith.addf %53, %64 : vector<8x16x128xf32>
    %66 = vector.extract_strided_slice %2 {offsets = [7, 0], sizes = [1, 128], strides = [1, 1]} : vector<9x128xf32> to vector<1x128xf32>
    %67 = vector.shape_cast %66 : vector<1x128xf32> to vector<128xf32>
    %68 = vector.shape_cast %67 : vector<128xf32> to vector<1x1x128xf32>
    %69 = vector.extract_strided_slice %58 {offsets = [0, 1, 0], sizes = [8, 16, 128], strides = [1, 1, 1]} : vector<8x18x128xf32> to vector<8x16x128xf32>
    %70 = vector.broadcast %68 : vector<1x1x128xf32> to vector<8x16x128xf32>
    %71 = arith.mulf %69, %70 : vector<8x16x128xf32>
    %72 = arith.addf %65, %71 : vector<8x16x128xf32>
    %73 = vector.extract_strided_slice %2 {offsets = [8, 0], sizes = [1, 128], strides = [1, 1]} : vector<9x128xf32> to vector<1x128xf32>
    %74 = vector.shape_cast %73 : vector<1x128xf32> to vector<128xf32>
    %75 = vector.shape_cast %74 : vector<128xf32> to vector<1x1x128xf32>
    %76 = vector.extract_strided_slice %58 {offsets = [0, 2, 0], sizes = [8, 16, 128], strides = [1, 1, 1]} : vector<8x18x128xf32> to vector<8x16x128xf32>
    %77 = vector.broadcast %75 : vector<1x1x128xf32> to vector<8x16x128xf32>
    %78 = arith.mulf %76, %77 : vector<8x16x128xf32>
    %79 = arith.addf %72, %78 : vector<8x16x128xf32>
    %80 = vector.shape_cast %79 : vector<8x16x128xf32> to vector<128x128xf32>
    %81 = arith.truncf %80 : vector<128x128xf32> to vector<128x128xbf16>
    %c0_10 = arith.constant 0 : index
    %c0_11 = arith.constant 0 : index
    %82 = vector.load %arg4[%c0_10, %c0_11] : memref<128x128xbf16, #tpu.memory_space<vmem>>, vector<128x128xbf16>
    %cst = arith.constant dense<0.000000e+00> : vector<128x128xf32>
    %83 = tpu.matmul %81, %82, %cst {dimension_numbers = #tpu.dot_dimension_numbers<[1], [0], [0], [1], [0, 0, 1, 1], [], []>} : vector<128x128xbf16>, vector<128x128xbf16>, vector<128x128xf32> -> vector<128x128xf32>
    %c0_12 = arith.constant 0 : index
    %c0_13 = arith.constant 0 : index
    %84 = vector.load %arg5[%c0_12, %c0_13] : memref<1x128xf32, #tpu.memory_space<vmem>>, vector<1x128xf32>
    %85 = vector.broadcast %84 : vector<1x128xf32> to vector<128x128xf32>
    %86 = arith.addf %83, %85 : vector<128x128xf32>
    %cst_14 = arith.constant 0.000000e+00 : f32
    %87 = vector.broadcast %cst_14 : f32 to vector<128x128xf32>
    %88 = arith.maximumf %86, %87 : vector<128x128xf32>
    %c0_15 = arith.constant 0 : index
    %c0_16 = arith.constant 0 : index
    %c0_17 = arith.constant 0 : index
    %89 = vector.load %arg6[%c0_15, %c0_16, %c0_17] : memref<1x128x128xf32, #tpu.memory_space<vmem>>, vector<1x128x128xf32>
    %90 = vector.shape_cast %89 : vector<1x128x128xf32> to vector<128x128xf32>
    %91 = vector.shape_cast %88 : vector<128x128xf32> to vector<1x128x128xf32>
    tpu.vector_store %arg6[%c0_15, %c0_16, %c0_17], %91 {strides = array<i32>} : memref<1x128x128xf32, #tpu.memory_space<vmem>>, vector<1x128x128xf32>,
    return
  }
  func.func @transform_0(%arg0: i32, %arg1: i32) -> (i32, i32, i32, i32) {
    %c0_i32 = arith.constant 0 : i32
    %c0_i32_0 = arith.constant 0 : i32
    %c0_i32_1 = arith.constant 0 : i32
    %c0_i32_2 = arith.constant 0 : i32
    return %arg0, %c0_i32, %c0_i32_0, %c0_i32_1 : i32, i32, i32, i32
  }
  func.func @transform_1(%arg0: i32, %arg1: i32) -> (i32, i32) {
    %c0_i32 = arith.constant 0 : i32
    %c0_i32_0 = arith.constant 0 : i32
    %c0_i32_1 = arith.constant 0 : i32
    return %c0_i32, %c0_i32_0 : i32, i32
  }
  func.func @transform_2(%arg0: i32, %arg1: i32) -> (i32, i32) {
    %c0_i32 = arith.constant 0 : i32
    %c0_i32_0 = arith.constant 0 : i32
    %c0_i32_1 = arith.constant 0 : i32
    return %c0_i32, %c0_i32_0 : i32, i32
  }
  func.func @transform_3(%arg0: i32, %arg1: i32) -> (i32, i32) {
    %c0_i32 = arith.constant 0 : i32
    %c0_i32_0 = arith.constant 0 : i32
    %c0_i32_1 = arith.constant 0 : i32
    return %c0_i32, %c0_i32_0 : i32, i32
  }
  func.func @transform_4(%arg0: i32, %arg1: i32) -> (i32, i32, i32) {
    %c0_i32 = arith.constant 0 : i32
    %c0_i32_0 = arith.constant 0 : i32
    return %arg0, %arg1, %c0_i32 : i32, i32, i32
  }
}

</mosaic_0001>

<bundles_post_ra>
// kernel: depthwise_separable.1
= control target key start
LH: loop header
LB: loop body
LE: loop exit
PB: predicated region body
PF: predicated region fallthrough
CT: control target
= control target key end

     0   :  { %9 = vsyncpa [#allocation3], 0  ;;  %s2471_s0 = inlined_call_operand.vmem [shape: bf16[2,18,18,128], index: 0, kind: input, shape index: {}]   ;;  %s2472_s1 = inlined_call_operand.vmem [shape: f32[9,128], index: 1, kind: input, shape index: {}]   ;;  %s2473_s2 = inlined_call_operand.vmem [shape: bf16[128,128], index: 2, kind: input, shape index: {}]   ;;  %s2474_s3 = inlined_call_operand.vmem [shape: f32[1,128], index: 3, kind: input, shape index: {}]   ;;  %s2475_s4 = inlined_call_operand.hbm [shape: f32[2,256,128], index: 4, kind: output, shape index: {}]  }
   0x1   :  { %11 = vsyncpa [#allocation3 + $0x1], 0  ;;  %s1833_s15 = smov 0   ;;  %s1835_s16 = smov 0  }
   0x2   :  { %s1837_s17 = smov 0   ;;  %s1839_s18 = smov 0  }
   0x3   :  { %s1841_s19 = smov 0   ;;  %s1843_s20 = smov 0  }
   0x4   :  { %s1845_s21 = smov 0   ;;  %s1847_s22 = smov 0  }
   0x5 LB: > { %s1441_s23 = sadd.s32 4294967295, %s1804_s22   ;;  %s1442_s24 = sadd.s32 4294967294, %s1804_s22   ;;  %s1804_s22 = sphi %s1847_s22, %s17_s22   ;;  %s1800_s21 = sphi %s1845_s21, %s2484_s21   ;;  %s1796_s20 = sphi %s1843_s20, %s2483_s20   ;;  %s1792_s19 = sphi %s1841_s19, %s2482_s19   ;;  %s1788_s18 = sphi %s1839_s18, %s2481_s18   ;;  %s1784_s17 = sphi %s1837_s17, %s2480_s17   ;;  %s1780_s16 = sphi %s1835_s16, %s2479_s16   ;;  %s1776_s15 = sphi %s1833_s15, %s2478_s15  }
   0x6   : > { %s26_s25 = sadd.s32 1, %s1796_s20  ;;  %s29_s26 = sadd.s32 1, %s1800_s21 }
   0x7   : > { %p27_p0 = scmp.ge.s32.totalorder %s26_s25, 2  ;;  %p137_p1 = scmp.ne.s32.totalorder %s1784_s17, %s1780_s16 }
   0x8   : > { %p138_p2 = scmp.eq.s32.totalorder %s1441_s23, 3  ;;  %p143_p5 = scmp.ne.s32.totalorder %s1780_s16, %s1776_s15 }
   0x9   : > { %s2486_s25 = smov (%p27_p0, %s26_s25), 0  ;;  %s2488_s26 = smov (!%p27_p0, %s29_s26), %s1800_s21 }
   0xa   : > { %s123_s27 = ssub.s32 %s1796_s20, %s2486_s25  ;;  %p1884_p3 = por %p138_p2, %p137_p1 }
   0xb   : > { %p31_p4 = scmp.ge.s32.totalorder %s2488_s26, 2  ;;  %p144_p6 = scmp.eq.s32.totalorder %s1442_s24, 3 }
   0xc   : > { %p1445_p7 = scmp.ge.s32.totalorder %s1804_s22, 1  ;;  %p179_p9 = scmp.lt.s32.totalorder %s1804_s22, 5 }
   0xd   : > { %s2490_s26 = smov (%p31_p4, %s2488_s26), 0  ;;  %p1893_p8 = por %p144_p6, %p143_p5 }
   0xe   : > { %s122_s30 = ssub.s32 %s1800_s21, %s2490_s26  ;;  %s127_s5 = sadd.s32 1, %s1784_s17 }
   0xf   : > { %s124_s6 = sor.u32 %s123_s27, %s122_s30  ;;  %p180_p10 = pnand %p1445_p7, %p179_p9 }
  0x10   : > { %p125_p11 = scmp.eq.s32.totalorder %s124_s6, 0  ;;  %p205_p12 = scmp.lt.s32.totalorder (!%p180_p10), %s1792_s19, 1 }
  0x11   : > { %183 = sbr.rel (%p180_p10) target bundleno = 339 (0x153), region = 36  ;;  %s1537_s27 = sshll.u32 (!%p180_p10), %s1792_s19, 5 }
  0x12   : > { %s1902_s7 = scalar_select %p125_p11, %s1784_s17, %s127_s5  }
  0x13   : > { %s1541_s23 = smul.u32 (!%p180_p10), 96, %s1788_s18 }
  0x16   : > { %v1549_v0 = vld [vmem:[%s2473_s2 + $0x38] sm:$0xff]  ;;  %v1548_v1 = vld [vmem:[%s2473_s2 + $0x30] sm:$0xff]  ;;  %s206_s12 = scalar_select %p205_p12, %s1792_s19, 1  ;;  %v212_v2 = vld [vmem:[%s2472_s1] sm:$0xff]  ;;  %vm331_vm0 = vcmask 1046528   ;;  %vm453_vm1 = vcmask 1045504  }
  0x17   : > { %1256 = vmatpush.bf16.msra.mxu0 %v1549_v0  ;;  %1609 = vmatpush.bf16.msra.mxu1 %v1549_v0  ;;  %v1547_v3 = vld [vmem:[%s2473_s2 + $0x28] sm:$0xff]  ;;  %v1922_v4 = vperm.slane %v212_v2, 0  ;;  %v1924_v5 = vperm.slane %v212_v2, 1  ;;  %v1928_v6 = vperm.slane %v212_v2, 2  ;;  %v1930_v7 = vperm.slane %v212_v2, 3  ;;  %v1546_v22 = vld [vmem:[%s2473_s2 + $0x20] sm:$0xff] }
  0x18   : > { %1610 = vmatpush.bf16.msra.mxu2 %v1549_v0  ;;  %1611 = vmatpush.bf16.msra.mxu3 %v1549_v0  ;;  %s1633_s24 = smul.u32 216, %s206_s12  ;;  %v1932_v8 = vperm.slane %v212_v2, 4  ;;  %v1934_v9 = vperm.slane %v212_v2, 5  ;;  %v1939_v13 = vperm.slane %v212_v2, 6  ;;  %v1941_v14 = vperm.slane %v212_v2, 7  ;;  %v1545_v39 = vld [vmem:[%s2473_s2 + $0x18] sm:$0xff] }
  0x19   : > { %v1544_v56 = vld [vmem:[%s2473_s2 + $0x10] sm:$0xff] }
  0x1a   : > { %s209_s8 = scalar_lea.vmem %s2471_s0, %s1633_s24  ;;  %s1536_s24 = sshll.u32 %s1788_s18, 4 }
  0x1b   : > { %1257 = vmatpush.bf16.msra.mxu0 %v1548_v1  ;;  %1612 = vmatpush.bf16.msra.mxu1 %v1548_v1  ;;  %s1926_s9 = scalar_lea.vmem %s209_s8, %s1541_s23  ;;  %s1349_s30 = sadd.s32 %s1537_s27, %s1536_s24 }
  0x1c   : > { %1613 = vmatpush.bf16.msra.mxu2 %v1548_v1  ;;  %1614 = vmatpush.bf16.msra.mxu3 %v1548_v1  ;;  %v1551_v10 = vld [vmem:[%s1926_s9] sm:$0xff]   ;;  %v219_v11 = vld [vmem:[%s1926_s9 + $0x8] sm:$0x1]  ;;  %v1453_v12 = vld [vmem:[%s1926_s9 + $0xc] sm:$0xff]   ;;  %s1538_s5 = sshll.u32 %s1349_s30, 3  ;;  %s1730_s27 = scalar_lea.hbm %s2475_s4, 512 }
  0x1d   : > { %v1552_v15 = vunpack.c.l.bf16 %v1551_v10  ;;  %v1553_v16 = vunpack.c.h.bf16 %v1551_v10  ;;  %v243_v17 = vunpack.c.l.bf16 %v219_v11  ;;  %v1455_v18 = vld [vmem:[%s1926_s9 + $0x14] sm:$0x1]  ;;  %v554_v19 = vunpack.c.l.bf16 %v1453_v12  ;;  %v1605_v20 = vld [vmem:[%s1926_s9 + $0x18] sm:$0xff]   ;;  %v1946_v21 = vld [vmem:[%s1926_s9 + $0x20] sm:$0x1]  ;;  %s1351_s10 = scalar_lea.hbm %s2475_s4, %s1538_s5 }
  0x1e   : > { %v555_v23 = vunpack.c.h.bf16 %v1453_v12  ;;  %v556_v24 = vunpack.c.l.bf16 %v1455_v18  ;;  %v1951_v25 = vunpack.c.l.bf16 %v1605_v20  ;;  %v1953_v26 = vunpack.c.h.bf16 %v1605_v20  ;;  %v225_v1 = vld [vmem:[%s1926_s9 + $0x20] sm:$0x1]  ;;  %v1990_v12 = vld [vmem:[%s2472_s1 + $0x8] ss:$0 sm:$0xff]  ;;  %s1354_s12 = sshll.u32 %s1351_s10, 4  ;;  %s1355_s12 = int_to_ptr.hbm [resolvable:$true] %s1354_s12 }
  0x1f   : > { %1258 = vmatpush.bf16.msra.mxu0 %v1547_v3  ;;  %1615 = vmatpush.bf16.msra.mxu1 %v1547_v3  ;;  %v266_v27 = vmul.f32 %v1552_v15, %v1922_v4  ;;  %v267_v28 = vmul.f32 %v1553_v16, %v1922_v4  ;;  %v283_v29 = vmul.f32 %v1552_v15, %v1924_v5  ;;  %v883_v30 = vunpack.c.l.bf16 %v1946_v21  ;;  %s1724_s19 = sshra.s32 %s1355_s12, 4  ;;  %s1725_s19 = int_to_ptr.hbm [resolvable:$true] %s1724_s19 }
  0x20   : > { %1616 = vmatpush.bf16.msra.mxu2 %v1547_v3  ;;  %1617 = vmatpush.bf16.msra.mxu3 %v1547_v3  ;;  %v284_v31 = vmul.f32 %v1553_v16, %v1924_v5  ;;  %v285_v32 = vmul.f32 %v1924_v5, %v243_v17  ;;  %v405_v33 = vmul.f32 %v1552_v15, %v1928_v6  ;;  %s1726_s13 = scalar_lea.hbm %s1725_s19, 128  ;;  %p1731_p2 = scmp.lt.s32.totalorder %s1725_s19, %s2475_s4 }
  0x21   : > { %v406_v34 = vmul.f32 %v1553_v16, %v1928_v6  ;;  %v332_v35 = vrot.slane %v283_v29, 1  ;;  %v407_v36 = vmul.f32 %v1928_v6, %v243_v17  ;;  %v579_v37 = vmul.f32 %v1930_v7, %v554_v19  ;;  %p1727_p13 = scmp.ne.s32.totalorder %s1725_s19, %s1726_s13  ;;  %p1732_p4 = scmp.lt.s32.totalorder %s1730_s27, %s1726_s13 }
  0x22   : > { %v580_v38 = vmul.f32 %v1930_v7, %v555_v23  ;;  %v333_v40 = vrot.slane %v284_v31, 1  ;;  %v335_v41 = vrot.slane %v285_v32, 1  ;;  %v454_v42 = vrot.slane %v405_v33, 2 }
  0x23   : > { %1259 = vmatpush.bf16.msra.mxu0 %v1546_v22  ;;  %1618 = vmatpush.bf16.msra.mxu1 %v1546_v22  ;;  %v455_v43 = vrot.slane %v406_v34, 2  ;;  %v457_v44 = vrot.slane %v407_v36, 2  ;;  %v612_v45 = vmul.f32 %v1932_v8, %v554_v19  ;;  %v613_v46 = vmul.f32 %v1932_v8, %v555_v23  ;;  %v1459_v36 = vld [vmem:[%s1926_s9 + $0x24] sm:$0xff]   ;;  %p1728_p0 = pnand %p1727_p13, %p1884_p3  ;;  %p1733_p5 = por %p1732_p4, %p1731_p2 }
  0x24   : > { %1619 = vmatpush.bf16.msra.mxu2 %v1546_v22  ;;  %1620 = vmatpush.bf16.msra.mxu3 %v1546_v22  ;;  %v614_v47 = vmul.f32 %v1932_v8, %v556_v24  ;;  %v334_v48 = vsel %vm331_vm0, %v332_v35, %v333_v40  ;;  %v336_v49 = vsel %vm331_vm0, %v333_v40, %v335_v41  ;;  %v1542_v41 = vld [vmem:[%s2473_s2] sm:$0xff] }
  0x25   : > { %v456_v50 = vsel %vm453_vm1, %v454_v42, %v455_v43  ;;  %v733_v51 = vmul.f32 %v1934_v9, %v554_v19  ;;  %v388_v52 = vadd.f32 %v334_v48, %v266_v27  ;;  %v389_v53 = vadd.f32 %v336_v49, %v267_v28  ;;  %v1543_v19 = vld [vmem:[%s2473_s2 + $0x8] sm:$0xff]  ;;  %p1729_p1 = pneg %p1728_p0 }
  0x26   : > { %v458_v54 = vsel %vm453_vm1, %v455_v43, %v457_v44  ;;  %v660_v55 = vrot.slane %v612_v45, 1  ;;  %v661_v57 = vrot.slane %v613_v46, 1  ;;  %v663_v58 = vrot.slane %v614_v47, 1 }
  0x27   : > { %1260 = vmatpush.bf16.msra.mxu0 %v1545_v39  ;;  %1621 = vmatpush.bf16.msra.mxu1 %v1545_v39  ;;  %v734_v59 = vmul.f32 %v1934_v9, %v555_v23  ;;  %v735_v60 = vmul.f32 %v1934_v9, %v556_v24  ;;  %v510_v61 = vadd.f32 %v456_v50, %v388_v52  ;;  %v781_v63 = vrot.slane %v733_v51, 2  ;;  %p1734_p6 = pnand %p1733_p5, %p1729_p1 }
  0x28   : > { %1622 = vmatpush.bf16.msra.mxu2 %v1545_v39  ;;  %1623 = vmatpush.bf16.msra.mxu3 %v1545_v39  ;;  %v511_v62 = vadd.f32 %v458_v54, %v389_v53  ;;  %v906_v0 = vmul.f32 %v1951_v25, %v1939_v13  ;;  %v662_v2 = vsel %vm331_vm0, %v660_v55, %v661_v57  ;;  %v249_v24 = vunpack.c.l.bf16 %v225_v1 }
  0x29   : > { %v664_v3 = vsel %vm331_vm0, %v661_v57, %v663_v58  ;;  %v782_v10 = vrot.slane %v734_v59, 2  ;;  %v784_v11 = vrot.slane %v735_v60, 2  ;;  %v595_v15 = vadd.f32 %v579_v37, %v510_v61  ;;  %v1461_v60 = vld [vmem:[%s1926_s9 + $0x2c] sm:$0x1] }
  0x2a   : > { %v596_v16 = vadd.f32 %v580_v38, %v511_v62  ;;  %v907_v17 = vmul.f32 %v1953_v26, %v1939_v13  ;;  %v939_v18 = vmul.f32 %v1951_v25, %v1941_v14  ;;  %v940_v23 = vmul.f32 %v1953_v26, %v1941_v14 }
  0x2b   : > { %1261 = vmatpush.bf16.msra.mxu0 %v1544_v56  ;;  %1624 = vmatpush.bf16.msra.mxu1 %v1544_v56  ;;  %v783_v20 = vsel %vm453_vm1, %v781_v63, %v782_v10  ;;  %v785_v22 = vsel %vm453_vm1, %v782_v10, %v784_v11  ;;  %v716_v27 = vadd.f32 %v662_v2, %v595_v15  ;;  %v560_v47 = vunpack.c.l.bf16 %v1459_v36 }
  0x2c   : > { %1625 = vmatpush.bf16.msra.mxu2 %v1544_v56  ;;  %1626 = vmatpush.bf16.msra.mxu3 %v1544_v56  ;;  %v717_v28 = vadd.f32 %v664_v3, %v596_v16  ;;  %v941_v29 = vmul.f32 %v1941_v14, %v883_v30  ;;  %v987_v31 = vrot.slane %v939_v18, 1  ;;  %v988_v32 = vrot.slane %v940_v23, 1 }
  0x2d   : > { %v1060_v33 = vmul.f32 %v1990_v12, %v1951_v25  ;;  %v1061_v34 = vmul.f32 %v1990_v12, %v1953_v26  ;;  %v1062_v35 = vmul.f32 %v1990_v12, %v883_v30  ;;  %v837_v37 = vadd.f32 %v783_v20, %v716_v27 }
  0x2e   : > { %v838_v38 = vadd.f32 %v785_v22, %v717_v28  ;;  %v990_v39 = vrot.slane %v941_v29, 1  ;;  %v270_v40 = vmul.f32 %v1951_v25, %v1922_v4  ;;  %v989_v42 = vsel %vm331_vm0, %v987_v31, %v988_v32 }
  0x2f   : > { %1262 = vmatpush.bf16.msra.mxu0 %v1543_v19  ;;  %1627 = vmatpush.bf16.msra.mxu1 %v1543_v19  ;;  %v1108_v43 = vrot.slane %v1060_v33, 2  ;;  %v1109_v44 = vrot.slane %v1061_v34, 2  ;;  %v1111_v21 = vrot.slane %v1062_v35, 2  ;;  %v922_v30 = vadd.f32 %v906_v0, %v837_v37  ;;  %v1606_v34 = vld [vmem:[%s1926_s9 + $0x30] sm:$0xff]  }
  0x30   : > { %1628 = vmatpush.bf16.msra.mxu2 %v1543_v19  ;;  %1629 = vmatpush.bf16.msra.mxu3 %v1543_v19  ;;  %v923_v45 = vadd.f32 %v907_v17, %v838_v38  ;;  %v991_v46 = vsel %vm331_vm0, %v988_v32, %v990_v39  ;;  %v271_v50 = vmul.f32 %v1953_v26, %v1922_v4  ;;  %v561_v10 = vunpack.c.h.bf16 %v1459_v36  ;;  %v1487_v39 = vld [vmem:[%s1926_s9 + $0x38] sm:$0x1] }
  0x31   : > { %v1110_v48 = vsel %vm453_vm1, %v1108_v43, %v1109_v44  ;;  %v1112_v49 = vsel %vm453_vm1, %v1109_v44, %v1111_v21  ;;  %v289_v51 = vmul.f32 %v1951_v25, %v1924_v5  ;;  %v1043_v52 = vadd.f32 %v989_v42, %v922_v30 }
  0x32   : > { %v1044_v53 = vadd.f32 %v991_v46, %v923_v45  ;;  %v290_v54 = vmul.f32 %v1953_v26, %v1924_v5  ;;  %v291_v55 = vmul.f32 %v1924_v5, %v249_v24  ;;  %v411_v57 = vmul.f32 %v1951_v25, %v1928_v6 }
  0x33   : > { %1263 = vmatpush.bf16.msra.mxu0 %v1542_v41  ;;  %1630 = vmatpush.bf16.msra.mxu1 %v1542_v41  ;;  %v342_v56 = vrot.slane %v289_v51, 1  ;;  %v412_v58 = vmul.f32 %v1953_v26, %v1928_v6  ;;  %v413_v59 = vmul.f32 %v1928_v6, %v249_v24  ;;  %v1164_v61 = vadd.f32 %v1110_v48, %v1043_v52 }
  0x34   : > { %1631 = vmatpush.bf16.msra.mxu2 %v1542_v41  ;;  %1632 = vmatpush.bf16.msra.mxu3 %v1542_v41  ;;  %v1165_v62 = vadd.f32 %v1112_v49, %v1044_v53  ;;  %v343_v63 = vrot.slane %v290_v54, 1  ;;  %v345_v0 = vrot.slane %v291_v55, 1  ;;  %v464_v1 = vrot.slane %v411_v57, 2 }
  0x35   : > { %v465_v2 = vrot.slane %v412_v58, 2  ;;  %v467_v3 = vrot.slane %v413_v59, 2  ;;  %v562_v17 = vunpack.c.l.bf16 %v1461_v60  ;;  %v583_v23 = vmul.f32 %v1930_v7, %v560_v47 }
  0x36   : > { %v1180_v11 = vpack.c.bf16 %v1165_v62, %v1164_v61  ;;  %v344_v15 = vsel %vm331_vm0, %v342_v56, %v343_v63  ;;  %v346_v16 = vsel %vm331_vm0, %v343_v63, %v345_v0  ;;  %v584_v24 = vmul.f32 %v1930_v7, %v561_v10  ;;  %v231_v62 = vld [vmem:[%s1926_s9 + $0x38] sm:$0x1] }
  0x37   : > { %v392_v18 = vadd.f32 %v344_v15, %v270_v40  ;;  %v393_v19 = vadd.f32 %v346_v16, %v271_v50  ;;  %v466_v20 = vsel %vm453_vm1, %v464_v1, %v465_v2  ;;  %v468_v22 = vsel %vm453_vm1, %v465_v2, %v467_v3 }
  0x38   : > { %1264 = vmatmul.bf16.vlgmr.msra.gmra.mxu0 %v1180_v11  ;;  %v618_v27 = vmul.f32 %v1932_v8, %v560_v47  ;;  %v619_v28 = vmul.f32 %v1932_v8, %v561_v10  ;;  %v620_v32 = vmul.f32 %v1932_v8, %v562_v17  ;;  %v739_v33 = vmul.f32 %v1934_v9, %v560_v47 }
  0x39   : > { %v514_v29 = vadd.f32 %v466_v20, %v392_v18  ;;  %v515_v31 = vadd.f32 %v468_v22, %v393_v19  ;;  %v740_v37 = vmul.f32 %v1934_v9, %v561_v10  ;;  %v741_v38 = vmul.f32 %v1934_v9, %v562_v17 }
  0x3a   : > { %v670_v35 = vrot.slane %v618_v27, 1  ;;  %v671_v36 = vrot.slane %v619_v28, 1  ;;  %v673_v42 = vrot.slane %v620_v32, 1  ;;  %v791_v43 = vrot.slane %v739_v33, 2  ;;  %v1465_v32 = vld [vmem:[%s1926_s9 + $0x3c] sm:$0xff]  }
  0x3b   : > { %v599_v40 = vadd.f32 %v583_v23, %v514_v29  ;;  %v600_v41 = vadd.f32 %v584_v24, %v515_v31  ;;  %v792_v21 = vrot.slane %v740_v37, 2  ;;  %v794_v30 = vrot.slane %v741_v38, 2 }
  0x3c   : > { %v672_v44 = vsel %vm331_vm0, %v670_v35, %v671_v36  ;;  %v2051_v45 = vunpack.c.l.bf16 %v1606_v34  ;;  %v674_v46 = vsel %vm331_vm0, %v671_v36, %v673_v42  ;;  %v2054_v48 = vunpack.c.h.bf16 %v1606_v34 }
  0x3d   : > { %v720_v47 = vadd.f32 %v672_v44, %v599_v40  ;;  %v889_v49 = vunpack.c.l.bf16 %v1487_v39  ;;  %v721_v50 = vadd.f32 %v674_v46, %v600_v41  ;;  %v793_v51 = vsel %vm453_vm1, %v791_v43, %v792_v21  ;;  %v1467_v41 = vld [vmem:[%s1926_s9 + $0x44] sm:$0x1] }
  0x3e   : > { %v795_v52 = vsel %vm453_vm1, %v792_v21, %v794_v30  ;;  %v910_v53 = vmul.f32 %v2051_v45, %v1939_v13  ;;  %v911_v55 = vmul.f32 %v2054_v48, %v1939_v13  ;;  %v945_v56 = vmul.f32 %v2051_v45, %v1941_v14 }
  0x3f   : > { %v841_v54 = vadd.f32 %v793_v51, %v720_v47  ;;  %v946_v57 = vmul.f32 %v2054_v48, %v1941_v14  ;;  %v842_v58 = vadd.f32 %v795_v52, %v721_v50  ;;  %v947_v59 = vmul.f32 %v1941_v14, %v889_v49 }
  0x40   : > { %v1066_v60 = vmul.f32 %v1990_v12, %v2051_v45  ;;  %v1067_v61 = vmul.f32 %v1990_v12, %v2054_v48  ;;  %v997_v0 = vrot.slane %v945_v56, 1  ;;  %v1068_v2 = vmul.f32 %v1990_v12, %v889_v49 }
  0x41   : > { %v926_v63 = vadd.f32 %v910_v53, %v841_v54  ;;  %v998_v1 = vrot.slane %v946_v57, 1  ;;  %v927_v3 = vadd.f32 %v911_v55, %v842_v58  ;;  %v1000_v10 = vrot.slane %v947_v59, 1 }
  0x42   : > { %v1118_v11 = vrot.slane %v1066_v60, 2  ;;  %v1119_v15 = vrot.slane %v1067_v61, 2  ;;  %v1121_v17 = vrot.slane %v1068_v2, 2  ;;  %v255_v18 = vunpack.c.l.bf16 %v231_v62  ;;  %v1607_v2 = vld [vmem:[%s1926_s9 + $0x48] sm:$0xff]  }
  0x43   : > { %v999_v16 = vsel %vm331_vm0, %v997_v0, %v998_v1  ;;  %v274_v19 = vmul.f32 %v2051_v45, %v1922_v4  ;;  %v1001_v20 = vsel %vm331_vm0, %v998_v1, %v1000_v10  ;;  %v275_v24 = vmul.f32 %v2054_v48, %v1922_v4 }
  0x44   : > { %v1047_v22 = vadd.f32 %v999_v16, %v926_v63  ;;  %v1120_v23 = vsel %vm453_vm1, %v1118_v11, %v1119_v15  ;;  %v1048_v27 = vadd.f32 %v1001_v20, %v927_v3  ;;  %v1122_v28 = vsel %vm453_vm1, %v1119_v15, %v1121_v17  ;;  %v1493_v20 = vld [vmem:[%s1926_s9 + $0x50] sm:$0x1] }
  0x45   : > { %v295_v29 = vmul.f32 %v2051_v45, %v1924_v5  ;;  %v296_v31 = vmul.f32 %v2054_v48, %v1924_v5  ;;  %v297_v34 = vmul.f32 %v1924_v5, %v255_v18  ;;  %v417_v35 = vmul.f32 %v2051_v45, %v1928_v6 }
  0x46   : > { %v1168_v33 = vadd.f32 %v1120_v23, %v1047_v22  ;;  %v418_v36 = vmul.f32 %v2054_v48, %v1928_v6  ;;  %v1169_v37 = vadd.f32 %v1122_v28, %v1048_v27  ;;  %v419_v40 = vmul.f32 %v1928_v6, %v255_v18 }
  0x47   : > { %v352_v38 = vrot.slane %v295_v29, 1  ;;  %v353_v39 = vrot.slane %v296_v31, 1  ;;  %v355_v42 = vrot.slane %v297_v34, 1  ;;  %v474_v43 = vrot.slane %v417_v35, 2 }
  0x48   : > { %v475_v44 = vrot.slane %v418_v36, 2  ;;  %v566_v21 = vunpack.c.l.bf16 %v1465_v32  ;;  %v1182_v30 = vpack.c.bf16 %v1169_v37, %v1168_v33  ;;  %v477_v47 = vrot.slane %v419_v40, 2 }
  0x49   : > { %v354_v46 = vsel %vm331_vm0, %v352_v38, %v353_v39  ;;  %v567_v49 = vunpack.c.h.bf16 %v1465_v32  ;;  %v356_v50 = vsel %vm331_vm0, %v353_v39, %v355_v42  ;;  %v568_v53 = vunpack.c.l.bf16 %v1467_v41  ;;  %v237_v41 = vld [vmem:[%s1926_s9 + $0x50] sm:$0x1] }
  0x4a   : > { %v396_v51 = vadd.f32 %v354_v46, %v274_v19  ;;  %v476_v52 = vsel %vm453_vm1, %v474_v43, %v475_v44  ;;  %1274 = vmatmul.bf16.vlgmr.msra.gmra.mxu1 %v1182_v30  ;;  %v397_v54 = vadd.f32 %v356_v50, %v275_v24  ;;  %v478_v55 = vsel %vm453_vm1, %v475_v44, %v477_v47 }
  0x4b   : > { %v587_v56 = vmul.f32 %v1930_v7, %v566_v21  ;;  %v588_v57 = vmul.f32 %v1930_v7, %v567_v49  ;;  %v624_v59 = vmul.f32 %v1932_v8, %v566_v21  ;;  %v625_v60 = vmul.f32 %v1932_v8, %v567_v49 }
  0x4c   : > { %v518_v58 = vadd.f32 %v476_v52, %v396_v51  ;;  %v626_v61 = vmul.f32 %v1932_v8, %v568_v53  ;;  %v519_v62 = vadd.f32 %v478_v55, %v397_v54  ;;  %v745_v63 = vmul.f32 %v1934_v9, %v566_v21 }
  0x4d   : > { %v746_v0 = vmul.f32 %v1934_v9, %v567_v49  ;;  %v747_v1 = vmul.f32 %v1934_v9, %v568_v53  ;;  %v680_v10 = vrot.slane %v624_v59, 1  ;;  %v681_v11 = vrot.slane %v625_v60, 1 }
  0x4e   : > { %v603_v3 = vadd.f32 %v587_v56, %v518_v58  ;;  %v683_v15 = vrot.slane %v626_v61, 1  ;;  %v604_v16 = vadd.f32 %v588_v57, %v519_v62  ;;  %v801_v17 = vrot.slane %v745_v63, 2  ;;  %v1471_v62 = vld [vmem:[%s1926_s9 + $0x54] sm:$0xff]  }
  0x4f   : > { %v802_v18 = vrot.slane %v746_v0, 2  ;;  %v804_v19 = vrot.slane %v747_v1, 2  ;;  %v682_v22 = vsel %vm331_vm0, %v680_v10, %v681_v11  ;;  %v2109_v24 = vunpack.c.l.bf16 %v1607_v2 }
  0x50   : > { %v684_v23 = vsel %vm331_vm0, %v681_v11, %v683_v15  ;;  %v2111_v27 = vunpack.c.h.bf16 %v1607_v2  ;;  %v724_v28 = vadd.f32 %v682_v22, %v603_v3  ;;  %v895_v33 = vunpack.c.l.bf16 %v1493_v20 }
  0x51   : > { %v725_v29 = vadd.f32 %v684_v23, %v604_v16  ;;  %v803_v31 = vsel %vm453_vm1, %v801_v17, %v802_v18  ;;  %v805_v32 = vsel %vm453_vm1, %v802_v18, %v804_v19  ;;  %v914_v34 = vmul.f32 %v2109_v24, %v1939_v13  ;;  %v1473_v16 = vld [vmem:[%s1926_s9 + $0x5c] sm:$0x1] }
  0x52   : > { %v915_v35 = vmul.f32 %v2111_v27, %v1939_v13  ;;  %v951_v36 = vmul.f32 %v2109_v24, %v1941_v14  ;;  %v845_v37 = vadd.f32 %v803_v31, %v724_v28  ;;  %v952_v39 = vmul.f32 %v2111_v27, %v1941_v14 }
  0x53   : > { %v846_v38 = vadd.f32 %v805_v32, %v725_v29  ;;  %v1072_v40 = vmul.f32 %v1990_v12, %v2109_v24  ;;  %v953_v42 = vmul.f32 %v1941_v14, %v895_v33  ;;  %v1073_v44 = vmul.f32 %v1990_v12, %v2111_v27 }
  0x54   : > { %v1007_v43 = vrot.slane %v951_v36, 1  ;;  %v1074_v21 = vmul.f32 %v1990_v12, %v895_v33  ;;  %v930_v30 = vadd.f32 %v914_v34, %v845_v37  ;;  %v1008_v47 = vrot.slane %v952_v39, 1 }
  0x55   : > { %v931_v46 = vadd.f32 %v915_v35, %v846_v38  ;;  %v1128_v49 = vrot.slane %v1072_v40, 2  ;;  %v1010_v50 = vrot.slane %v953_v42, 1  ;;  %v1129_v51 = vrot.slane %v1073_v44, 2 }
  0x56   : > { %v1131_v52 = vrot.slane %v1074_v21, 2  ;;  %v261_v53 = vunpack.c.l.bf16 %v237_v41  ;;  %v1009_v54 = vsel %vm331_vm0, %v1007_v43, %v1008_v47  ;;  %v278_v55 = vmul.f32 %v2109_v24, %v1922_v4 }
  0x57   : > { %v279_v56 = vmul.f32 %v2111_v27, %v1922_v4  ;;  %v301_v57 = vmul.f32 %v2109_v24, %v1924_v5  ;;  %v1011_v58 = vsel %vm331_vm0, %v1008_v47, %v1010_v50  ;;  %v1051_v59 = vadd.f32 %v1009_v54, %v930_v30 }
  0x58   : > { %v1130_v60 = vsel %vm453_vm1, %v1128_v49, %v1129_v51  ;;  %v1132_v61 = vsel %vm453_vm1, %v1129_v51, %v1131_v52  ;;  %v1052_v63 = vadd.f32 %v1011_v58, %v931_v46  ;;  %v302_v0 = vmul.f32 %v2111_v27, %v1924_v5  ;;  %v1608_v46 = vld [vmem:[%s1926_s9 + $0x60] sm:$0xff]   ;;  %v1499_v52 = vld [vmem:[%s1926_s9 + $0x68] sm:$0x1] }
  0x59   : > { %v303_v1 = vmul.f32 %v1924_v5, %v261_v53  ;;  %v362_v2 = vrot.slane %v301_v57, 1  ;;  %v1172_v3 = vadd.f32 %v1130_v60, %v1051_v59  ;;  %v423_v10 = vmul.f32 %v2109_v24, %v1928_v6 }
  0x5a   : > { %v424_v11 = vmul.f32 %v2111_v27, %v1928_v6  ;;  %v425_v15 = vmul.f32 %v1928_v6, %v261_v53  ;;  %v1173_v17 = vadd.f32 %v1132_v61, %v1052_v63  ;;  %v363_v18 = vrot.slane %v302_v0, 1 }
  0x5b   : > { %v365_v19 = vrot.slane %v303_v1, 1  ;;  %v572_v20 = vunpack.c.l.bf16 %v1471_v62  ;;  %v484_v22 = vrot.slane %v423_v10, 2  ;;  %v573_v29 = vunpack.c.h.bf16 %v1471_v62 }
  0x5c   : > { %v485_v23 = vrot.slane %v424_v11, 2  ;;  %v487_v28 = vrot.slane %v425_v15, 2  ;;  %v1184_v31 = vpack.c.bf16 %v1173_v17, %v1172_v3  ;;  %v364_v32 = vsel %vm331_vm0, %v362_v2, %v363_v18 }
  0x5d   : > { %v366_v33 = vsel %vm331_vm0, %v363_v18, %v365_v19  ;;  %v574_v34 = vunpack.c.l.bf16 %v1473_v16  ;;  %v400_v35 = vadd.f32 %v364_v32, %v278_v55  ;;  %v591_v39 = vmul.f32 %v1930_v7, %v572_v20 }
  0x5e   : > { %v401_v36 = vadd.f32 %v366_v33, %v279_v56  ;;  %v486_v37 = vsel %vm453_vm1, %v484_v22, %v485_v23  ;;  %v488_v38 = vsel %vm453_vm1, %v485_v23, %v487_v28  ;;  %1284 = vmatmul.bf16.vlgmr.msra.gmra.mxu2 %v1184_v31  ;;  %v592_v40 = vmul.f32 %v1930_v7, %v573_v29  ;;  %v220_v23 = vld [vmem:[%s1926_s9 + $0xc] sm:$0xff]   ;;  %v222_v33 = vld [vmem:[%s1926_s9 + $0x14] sm:$0x1] }
  0x5f   : > { %v630_v41 = vmul.f32 %v1932_v8, %v572_v20  ;;  %v631_v42 = vmul.f32 %v1932_v8, %v573_v29  ;;  %v522_v43 = vadd.f32 %v486_v37, %v400_v35  ;;  %v632_v21 = vmul.f32 %v1932_v8, %v574_v34 }
  0x60   : > { %v523_v44 = vadd.f32 %v488_v38, %v401_v36  ;;  %v751_v30 = vmul.f32 %v1934_v9, %v572_v20  ;;  %v752_v50 = vmul.f32 %v1934_v9, %v573_v29  ;;  %v753_v51 = vmul.f32 %v1934_v9, %v574_v34 }
  0x61   : > { %v690_v47 = vrot.slane %v630_v41, 1  ;;  %v691_v49 = vrot.slane %v631_v42, 1  ;;  %v607_v53 = vadd.f32 %v591_v39, %v522_v43  ;;  %v693_v55 = vrot.slane %v632_v21, 1 }
  0x62   : > { %v608_v54 = vadd.f32 %v592_v40, %v523_v44  ;;  %v811_v56 = vrot.slane %v751_v30, 2  ;;  %v812_v58 = vrot.slane %v752_v50, 2  ;;  %v814_v59 = vrot.slane %v753_v51, 2  ;;  %v1458_v50 = vld [vmem:[%s1926_s9 + $0x20] sm:$0x1] }
  0x63   : > { %v692_v57 = vsel %vm331_vm0, %v690_v47, %v691_v49  ;;  %v2165_v60 = vunpack.c.l.bf16 %v1608_v46  ;;  %v694_v61 = vsel %vm331_vm0, %v691_v49, %v693_v55  ;;  %v2168_v63 = vunpack.c.h.bf16 %v1608_v46 }
  0x64   : > { %v728_v62 = vadd.f32 %v692_v57, %v607_v53  ;;  %v901_v0 = vunpack.c.l.bf16 %v1499_v52  ;;  %v729_v1 = vadd.f32 %v694_v61, %v608_v54  ;;  %v813_v2 = vsel %vm453_vm1, %v811_v56, %v812_v58 }
  0x65   : > { %v815_v3 = vsel %vm453_vm1, %v812_v58, %v814_v59  ;;  %v918_v10 = vmul.f32 %v2165_v60, %v1939_v13  ;;  %v919_v15 = vmul.f32 %v2168_v63, %v1939_v13  ;;  %v957_v16 = vmul.f32 %v2165_v60, %v1941_v14 }
  0x66   : > { %v849_v11 = vadd.f32 %v813_v2, %v728_v62  ;;  %v958_v17 = vmul.f32 %v2168_v63, %v1941_v14  ;;  %v850_v18 = vadd.f32 %v815_v3, %v729_v1  ;;  %v959_v19 = vmul.f32 %v1941_v14, %v901_v0 }
  0x67   : > { %v1078_v20 = vmul.f32 %v1990_v12, %v2165_v60  ;;  %v1079_v22 = vmul.f32 %v1990_v12, %v2168_v63  ;;  %v1017_v29 = vrot.slane %v957_v16, 1  ;;  %v1080_v32 = vmul.f32 %v1990_v12, %v901_v0 }
  0x68   : > { %v934_v28 = vadd.f32 %v918_v10, %v849_v11  ;;  %v1018_v31 = vrot.slane %v958_v17, 1  ;;  %v935_v34 = vadd.f32 %v919_v15, %v850_v18  ;;  %v1020_v35 = vrot.slane %v959_v19, 1 }
  0x69   : > { %v1138_v36 = vrot.slane %v1078_v20, 2  ;;  %v1139_v37 = vrot.slane %v1079_v22, 2  ;;  %v1141_v39 = vrot.slane %v1080_v32, 2  ;;  %v244_v40 = vunpack.c.l.bf16 %v220_v23 }
  0x6a   : > { %v1019_v38 = vsel %vm331_vm0, %v1017_v29, %v1018_v31  ;;  %v245_v41 = vunpack.c.h.bf16 %v220_v23  ;;  %v1021_v42 = vsel %vm331_vm0, %v1018_v31, %v1020_v35  ;;  %v246_v21 = vunpack.c.l.bf16 %v222_v33 }
  0x6b   : > { %v1055_v43 = vadd.f32 %v1019_v38, %v934_v28  ;;  %v1140_v44 = vsel %vm453_vm1, %v1138_v36, %v1139_v37  ;;  %v1056_v30 = vadd.f32 %v1021_v42, %v935_v34  ;;  %v1142_v46 = vsel %vm453_vm1, %v1139_v37, %v1141_v39  ;;  %v1482_v36 = vld [vmem:[%s1926_s9 + $0x24] sm:$0xff]  }
  0x6c   : > { %v268_v47 = vmul.f32 %v1922_v4, %v244_v40  ;;  %v269_v49 = vmul.f32 %v1922_v4, %v245_v41  ;;  %v286_v52 = vmul.f32 %v1924_v5, %v244_v40  ;;  %v287_v53 = vmul.f32 %v1924_v5, %v245_v41 }
  0x6d   : > { %v1176_v51 = vadd.f32 %v1140_v44, %v1055_v43  ;;  %v288_v54 = vmul.f32 %v1924_v5, %v246_v21  ;;  %v1177_v55 = vadd.f32 %v1142_v46, %v1056_v30  ;;  %v408_v56 = vmul.f32 %v1928_v6, %v244_v40 }
  0x6e   : > { %v409_v57 = vmul.f32 %v1928_v6, %v245_v41  ;;  %v410_v58 = vmul.f32 %v1928_v6, %v246_v21  ;;  %v337_v59 = vrot.slane %v286_v52, 1  ;;  %v338_v61 = vrot.slane %v287_v53, 1  ;;  %v1484_v21 = vld [vmem:[%s1926_s9 + $0x2c] sm:$0x1] }
  0x6f   : > { %v340_v62 = vrot.slane %v288_v54, 1  ;;  %v559_v0 = vunpack.c.l.bf16 %v1458_v50  ;;  %v1186_v1 = vpack.c.bf16 %v1177_v55, %v1176_v51  ;;  %v459_v2 = vrot.slane %v408_v56, 2 }
  0x70   : > { %v460_v3 = vrot.slane %v409_v57, 2  ;;  %v462_v10 = vrot.slane %v410_v58, 2  ;;  %v339_v11 = vsel %vm331_vm0, %v337_v59, %v338_v61  ;;  %v581_v16 = vmul.f32 %v1951_v25, %v1930_v7 }
  0x71   : > { %v341_v15 = vsel %vm331_vm0, %v338_v61, %v340_v62  ;;  %v582_v17 = vmul.f32 %v1953_v26, %v1930_v7  ;;  %1294 = vmatmul.bf16.vlgmr.msra.gmra.mxu3 %v1186_v1  ;;  %v390_v18 = vadd.f32 %v339_v11, %v268_v47  ;;  %v615_v23 = vmul.f32 %v1951_v25, %v1932_v8  ;;  %v226_v61 = vld [vmem:[%s1926_s9 + $0x24] sm:$0xff]  }
  0x72   : > { %v391_v19 = vadd.f32 %v341_v15, %v269_v49  ;;  %v461_v20 = vsel %vm453_vm1, %v459_v2, %v460_v3  ;;  %v463_v22 = vsel %vm453_vm1, %v460_v3, %v462_v10  ;;  %v616_v28 = vmul.f32 %v1953_v26, %v1932_v8  ;;  %v228_v3 = vld [vmem:[%s1926_s9 + $0x2c] sm:$0x1]  ;;  %v1464_v10 = vld [vmem:[%s1926_s9 + $0x38] sm:$0x1] }
  0x73   : > { %v617_v29 = vmul.f32 %v1932_v8, %v559_v0  ;;  %v736_v31 = vmul.f32 %v1951_v25, %v1934_v9  ;;  %v512_v32 = vadd.f32 %v461_v20, %v390_v18  ;;  %v737_v34 = vmul.f32 %v1953_v26, %v1934_v9 }
  0x74   : > { %v513_v33 = vadd.f32 %v463_v22, %v391_v19  ;;  %v738_v35 = vmul.f32 %v1934_v9, %v559_v0  ;;  %v665_v37 = vrot.slane %v615_v23, 1  ;;  %v666_v38 = vrot.slane %v616_v28, 1 }
  0x75   : > { %v668_v39 = vrot.slane %v617_v29, 1  ;;  %v786_v40 = vrot.slane %v736_v31, 2  ;;  %v597_v41 = vadd.f32 %v581_v16, %v512_v32  ;;  %v787_v43 = vrot.slane %v737_v34, 2 }
  0x76   : > { %v598_v42 = vadd.f32 %v582_v17, %v513_v33  ;;  %v789_v44 = vrot.slane %v738_v35, 2  ;;  %v667_v30 = vsel %vm331_vm0, %v665_v37, %v666_v38  ;;  %v884_v46 = vunpack.c.l.bf16 %v1482_v36 }
  0x77   : > { %v669_v25 = vsel %vm331_vm0, %v666_v38, %v668_v39  ;;  %v885_v47 = vunpack.c.h.bf16 %v1482_v36  ;;  %v718_v26 = vadd.f32 %v667_v30, %v597_v41  ;;  %v788_v50 = vsel %vm453_vm1, %v786_v40, %v787_v43 }
  0x78   : > { %v719_v49 = vadd.f32 %v669_v25, %v598_v42  ;;  %v790_v51 = vsel %vm453_vm1, %v787_v43, %v789_v44  ;;  %v886_v52 = vunpack.c.l.bf16 %v1484_v21  ;;  %v908_v53 = vmul.f32 %v1939_v13, %v884_v46 }
  0x79   : > { %v909_v54 = vmul.f32 %v1939_v13, %v885_v47  ;;  %v942_v55 = vmul.f32 %v1941_v14, %v884_v46  ;;  %v839_v56 = vadd.f32 %v788_v50, %v718_v26  ;;  %v943_v58 = vmul.f32 %v1941_v14, %v885_v47 }
  0x7a   : > { %v840_v57 = vadd.f32 %v790_v51, %v719_v49  ;;  %v1063_v59 = vmul.f32 %v1990_v12, %v884_v46  ;;  %v944_v62 = vmul.f32 %v1941_v14, %v886_v52  ;;  %v1064_v1 = vmul.f32 %v1990_v12, %v885_v47 }
  0x7b   : > { %v992_v0 = vrot.slane %v942_v55, 1  ;;  %v1065_v2 = vmul.f32 %v1990_v12, %v886_v52  ;;  %v924_v11 = vadd.f32 %v908_v53, %v839_v56  ;;  %v993_v16 = vrot.slane %v943_v58, 1 }
  0x7c   : > { %v925_v15 = vadd.f32 %v909_v54, %v840_v57  ;;  %v1113_v17 = vrot.slane %v1063_v59, 2  ;;  %v995_v18 = vrot.slane %v944_v62, 1  ;;  %v1114_v19 = vrot.slane %v1064_v1, 2 }
  0x7d   : > { %v1116_v20 = vrot.slane %v1065_v2, 2  ;;  %v250_v22 = vunpack.c.l.bf16 %v226_v61  ;;  %v994_v23 = vsel %vm331_vm0, %v992_v0, %v993_v16  ;;  %v251_v28 = vunpack.c.h.bf16 %v226_v61  ;;  %v1488_v0 = vld [vmem:[%s1926_s9 + $0x3c] sm:$0xff]  }
  0x7e   : > { %v252_v29 = vunpack.c.l.bf16 %v228_v3  ;;  %v565_v31 = vunpack.c.l.bf16 %v1464_v10  ;;  %v996_v32 = vsel %vm331_vm0, %v993_v16, %v995_v18  ;;  %v1045_v33 = vadd.f32 %v994_v23, %v924_v11  ;;  %v1490_v18 = vld [vmem:[%s1926_s9 + $0x44] sm:$0x1] }
  0x7f   : > { %v1115_v34 = vsel %vm453_vm1, %v1113_v17, %v1114_v19  ;;  %v1117_v35 = vsel %vm453_vm1, %v1114_v19, %v1116_v20  ;;  %v1046_v36 = vadd.f32 %v996_v32, %v925_v15  ;;  %v272_v37 = vmul.f32 %v1922_v4, %v250_v22 }
  0x80   : > { %v273_v38 = vmul.f32 %v1922_v4, %v251_v28  ;;  %v292_v39 = vmul.f32 %v1924_v5, %v250_v22  ;;  %v1166_v40 = vadd.f32 %v1115_v34, %v1045_v33  ;;  %v293_v41 = vmul.f32 %v1924_v5, %v251_v28 }
  0x81   : > { %v294_v42 = vmul.f32 %v1924_v5, %v252_v29  ;;  %v414_v43 = vmul.f32 %v1928_v6, %v250_v22  ;;  %v1167_v44 = vadd.f32 %v1117_v35, %v1046_v36  ;;  %v415_v30 = vmul.f32 %v1928_v6, %v251_v28 }
  0x82   : > { %v347_v21 = vrot.slane %v292_v39, 1  ;;  %v416_v25 = vmul.f32 %v1928_v6, %v252_v29  ;;  %v348_v46 = vrot.slane %v293_v41, 1  ;;  %v585_v49 = vmul.f32 %v2051_v45, %v1930_v7 }
  0x83   : > { %v350_v47 = vrot.slane %v294_v42, 1  ;;  %v469_v26 = vrot.slane %v414_v43, 2  ;;  %v1181_v50 = vpack.c.bf16 %v1167_v44, %v1166_v40  ;;  %v470_v51 = vrot.slane %v415_v30, 2 }
  0x84   : > { %v472_v52 = vrot.slane %v416_v25, 2  ;;  %v586_v53 = vmul.f32 %v2054_v48, %v1930_v7  ;;  %v349_v54 = vsel %vm331_vm0, %v347_v21, %v348_v46  ;;  %v621_v56 = vmul.f32 %v2051_v45, %v1932_v8  ;;  %v232_v25 = vld [vmem:[%s1926_s9 + $0x3c] sm:$0xff]  }
  0x85   : > { %v351_v55 = vsel %vm331_vm0, %v348_v46, %v350_v47  ;;  %v622_v57 = vmul.f32 %v2054_v48, %v1932_v8  ;;  %1269 = vmatmul.bf16.gmra.mxu0 %v1181_v50  ;;  %v394_v58 = vadd.f32 %v349_v54, %v272_v37  ;;  %v471_v61 = vsel %vm453_vm1, %v469_v26, %v470_v51  ;;  %v234_v54 = vld [vmem:[%s1926_s9 + $0x44] sm:$0x1] }
  0x86   : > { %v395_v59 = vadd.f32 %v351_v55, %v273_v38  ;;  %v473_v62 = vsel %vm453_vm1, %v470_v51, %v472_v52  ;;  %v623_v1 = vmul.f32 %v1932_v8, %v565_v31  ;;  %v675_v2 = vrot.slane %v621_v56, 1 }
  0x87   : > { %v676_v3 = vrot.slane %v622_v57, 1  ;;  %v742_v10 = vmul.f32 %v2051_v45, %v1934_v9  ;;  %v516_v11 = vadd.f32 %v471_v61, %v394_v58  ;;  %v743_v16 = vmul.f32 %v2054_v48, %v1934_v9 }
  0x88   : > { %v517_v15 = vadd.f32 %v473_v62, %v395_v59  ;;  %v744_v17 = vmul.f32 %v1934_v9, %v565_v31  ;;  %v678_v20 = vrot.slane %v623_v1, 1  ;;  %v890_v23 = vunpack.c.l.bf16 %v1488_v0 }
  0x89   : > { %v677_v19 = vsel %vm331_vm0, %v675_v2, %v676_v3  ;;  %v796_v22 = vrot.slane %v742_v10, 2  ;;  %v601_v28 = vadd.f32 %v585_v49, %v516_v11  ;;  %v797_v32 = vrot.slane %v743_v16, 2  ;;  %v1470_v10 = vld [vmem:[%s1926_s9 + $0x50] sm:$0x1] }
  0x8a   : > { %v602_v29 = vadd.f32 %v586_v53, %v517_v15  ;;  %v799_v33 = vrot.slane %v744_v17, 2  ;;  %v679_v34 = vsel %vm331_vm0, %v676_v3, %v678_v20  ;;  %v891_v45 = vunpack.c.h.bf16 %v1488_v0 }
  0x8b   : > { %v892_v35 = vunpack.c.l.bf16 %v1490_v18  ;;  %v912_v36 = vmul.f32 %v1939_v13, %v890_v23  ;;  %v722_v48 = vadd.f32 %v677_v19, %v601_v28  ;;  %v798_v31 = vsel %vm453_vm1, %v796_v22, %v797_v32 }
  0x8c   : > { %v723_v37 = vadd.f32 %v679_v34, %v602_v29  ;;  %v800_v38 = vsel %vm453_vm1, %v797_v32, %v799_v33  ;;  %v913_v39 = vmul.f32 %v1939_v13, %v891_v45  ;;  %v948_v40 = vmul.f32 %v1941_v14, %v890_v23 }
  0x8d   : > { %v949_v41 = vmul.f32 %v1941_v14, %v891_v45  ;;  %v950_v42 = vmul.f32 %v1941_v14, %v892_v35  ;;  %v843_v43 = vadd.f32 %v798_v31, %v722_v48  ;;  %v1069_v21 = vmul.f32 %v1990_v12, %v890_v23 }
  0x8e   : > { %v844_v44 = vadd.f32 %v800_v38, %v723_v37  ;;  %v1070_v30 = vmul.f32 %v1990_v12, %v891_v45  ;;  %v1002_v46 = vrot.slane %v948_v40, 1  ;;  %v1071_v49 = vmul.f32 %v1990_v12, %v892_v35 }
  0x8f   : > { %v1003_v47 = vrot.slane %v949_v41, 1  ;;  %v1005_v26 = vrot.slane %v950_v42, 1  ;;  %v928_v50 = vadd.f32 %v912_v36, %v843_v43  ;;  %v1123_v52 = vrot.slane %v1069_v21, 2  ;;  %v1494_v42 = vld [vmem:[%s1926_s9 + $0x54] sm:$0xff]  }
  0x90   : > { %v929_v51 = vadd.f32 %v913_v39, %v844_v44  ;;  %v1124_v53 = vrot.slane %v1070_v30, 2  ;;  %v1126_v57 = vrot.slane %v1071_v49, 2  ;;  %v256_v58 = vunpack.c.l.bf16 %v232_v25 }
  0x91   : > { %v1004_v55 = vsel %vm331_vm0, %v1002_v46, %v1003_v47  ;;  %v1006_v56 = vsel %vm331_vm0, %v1003_v47, %v1005_v26  ;;  %v257_v0 = vunpack.c.h.bf16 %v232_v25  ;;  %v258_v12 = vunpack.c.l.bf16 %v234_v54 }
  0x92   : > { %v1049_v59 = vadd.f32 %v1004_v55, %v928_v50  ;;  %v1050_v61 = vadd.f32 %v1006_v56, %v929_v51  ;;  %v1125_v62 = vsel %vm453_vm1, %v1123_v52, %v1124_v53  ;;  %v1127_v1 = vsel %vm453_vm1, %v1124_v53, %v1126_v57  ;;  %v1496_v52 = vld [vmem:[%s1926_s9 + $0x5c] sm:$0x1] }
  0x93   : > { %v276_v2 = vmul.f32 %v1922_v4, %v256_v58  ;;  %v298_v3 = vmul.f32 %v1924_v5, %v256_v58  ;;  %v277_v16 = vmul.f32 %v1922_v4, %v257_v0  ;;  %v299_v17 = vmul.f32 %v1924_v5, %v257_v0 }
  0x94   : > { %v1170_v11 = vadd.f32 %v1125_v62, %v1049_v59  ;;  %v1171_v15 = vadd.f32 %v1127_v1, %v1050_v61  ;;  %v300_v18 = vmul.f32 %v1924_v5, %v258_v12  ;;  %v420_v20 = vmul.f32 %v1928_v6, %v256_v58 }
  0x95   : > { %v357_v19 = vrot.slane %v298_v3, 1  ;;  %v421_v22 = vmul.f32 %v1928_v6, %v257_v0  ;;  %v358_v28 = vrot.slane %v299_v17, 1  ;;  %v422_v29 = vmul.f32 %v1928_v6, %v258_v12  ;;  %v2327_v17 = vld [vmem:[%s2472_s1 + $0x8] ss:$0 sm:$0xff] }
  0x96   : > { %v1183_v23 = vpack.c.bf16 %v1171_v15, %v1170_v11  ;;  %v571_v32 = vunpack.c.l.bf16 %v1470_v10  ;;  %v360_v33 = vrot.slane %v300_v18, 1  ;;  %v479_v34 = vrot.slane %v420_v20, 2 }
  0x97   : > { %v480_v45 = vrot.slane %v421_v22, 2  ;;  %v589_v35 = vmul.f32 %v2109_v24, %v1930_v7  ;;  %v359_v36 = vsel %vm331_vm0, %v357_v19, %v358_v28  ;;  %v482_v48 = vrot.slane %v422_v29, 2  ;;  %v238_v19 = vld [vmem:[%s1926_s9 + $0x54] sm:$0xff]   ;;  %v240_v29 = vld [vmem:[%s1926_s9 + $0x5c] sm:$0x1] }
  0x98   : > { %1279 = vmatmul.bf16.gmra.mxu1 %v1183_v23  ;;  %v590_v37 = vmul.f32 %v2111_v27, %v1930_v7  ;;  %v627_v31 = vmul.f32 %v2109_v24, %v1932_v8  ;;  %v361_v38 = vsel %vm331_vm0, %v358_v28, %v360_v33  ;;  %v398_v39 = vadd.f32 %v359_v36, %v276_v2 }
  0x99   : > { %v481_v40 = vsel %vm453_vm1, %v479_v34, %v480_v45  ;;  %v628_v41 = vmul.f32 %v2111_v27, %v1932_v8  ;;  %v399_v43 = vadd.f32 %v361_v38, %v277_v16  ;;  %v483_v44 = vsel %vm453_vm1, %v480_v45, %v482_v48 }
  0x9a   : > { %v629_v21 = vmul.f32 %v1932_v8, %v571_v32  ;;  %v685_v30 = vrot.slane %v627_v31, 1  ;;  %v520_v25 = vadd.f32 %v481_v40, %v398_v39  ;;  %v748_v47 = vmul.f32 %v2109_v24, %v1934_v9 }
  0x9b   : > { %v686_v46 = vrot.slane %v628_v41, 1  ;;  %v749_v26 = vmul.f32 %v2111_v27, %v1934_v9  ;;  %v521_v49 = vadd.f32 %v483_v44, %v399_v43  ;;  %v750_v51 = vmul.f32 %v1934_v9, %v571_v32 }
  0x9c   : > { %v688_v50 = vrot.slane %v629_v21, 1  ;;  %v896_v53 = vunpack.c.l.bf16 %v1494_v42  ;;  %v605_v54 = vadd.f32 %v589_v35, %v520_v25  ;;  %v806_v56 = vrot.slane %v748_v47, 2  ;;  %v1476_v47 = vld [vmem:[%s1926_s9 + $0x68] sm:$0x1] }
  0x9d   : > { %v687_v55 = vsel %vm331_vm0, %v685_v30, %v686_v46  ;;  %v807_v57 = vrot.slane %v749_v26, 2  ;;  %v606_v58 = vadd.f32 %v590_v37, %v521_v49  ;;  %v809_v61 = vrot.slane %v750_v51, 2 }
  0x9e   : > { %v689_v59 = vsel %vm331_vm0, %v686_v46, %v688_v50  ;;  %v897_v24 = vunpack.c.h.bf16 %v1494_v42  ;;  %v726_v62 = vadd.f32 %v687_v55, %v605_v54  ;;  %v898_v0 = vunpack.c.l.bf16 %v1496_v52 }
  0x9f   : > { %v808_v27 = vsel %vm453_vm1, %v806_v56, %v807_v57  ;;  %v916_v1 = vmul.f32 %v1939_v13, %v896_v53  ;;  %v727_v12 = vadd.f32 %v689_v59, %v606_v58  ;;  %v810_v2 = vsel %vm453_vm1, %v807_v57, %v809_v61 }
  0xa0   : > { %v917_v3 = vmul.f32 %v1939_v13, %v897_v24  ;;  %v954_v10 = vmul.f32 %v1941_v14, %v896_v53  ;;  %v847_v11 = vadd.f32 %v808_v27, %v726_v62  ;;  %v955_v15 = vmul.f32 %v1941_v14, %v897_v24 }
  0xa1   : > { %v956_v16 = vmul.f32 %v1941_v14, %v898_v0  ;;  %v1075_v18 = vmul.f32 %v2327_v17, %v896_v53  ;;  %v848_v20 = vadd.f32 %v810_v2, %v727_v12  ;;  %v1076_v23 = vmul.f32 %v2327_v17, %v897_v24 }
  0xa2   : > { %v1012_v22 = vrot.slane %v954_v10, 1  ;;  %v1077_v28 = vmul.f32 %v2327_v17, %v898_v0  ;;  %v932_v32 = vadd.f32 %v916_v1, %v847_v11  ;;  %v1013_v33 = vrot.slane %v955_v15, 1  ;;  %v1500_v10 = vld [vmem:[%s1926_s9 + $0x6c] sm:$0xff]  }
  0xa3   : > { %v1015_v34 = vrot.slane %v956_v16, 1  ;;  %v1133_v45 = vrot.slane %v1075_v18, 2  ;;  %v933_v35 = vadd.f32 %v917_v3, %v848_v20  ;;  %v1134_v36 = vrot.slane %v1076_v23, 2  ;;  %v1502_v23 = vld [vmem:[%s1926_s9 + $0x74] sm:$0x1]  ;;  %s202_s9 = sand.u32 1, %s1780_s16  }
  0xa4   : > { %v1136_v48 = vrot.slane %v1077_v28, 2  ;;  %v262_v37 = vunpack.c.l.bf16 %v238_v19  ;;  %v1014_v31 = vsel %vm331_vm0, %v1012_v22, %v1013_v33  ;;  %v263_v39 = vunpack.c.h.bf16 %v238_v19  ;;  %s1446_s14 = sshll.u32 %s202_s9, 7  ;;  %s1338_s18 = scalar_lea.sflag [#allocation3], %s202_s9 }
  0xa5   : > { %v1016_v38 = vsel %vm331_vm0, %v1013_v33, %v1015_v34  ;;  %v264_v40 = vunpack.c.l.bf16 %v240_v29  ;;  %v1053_v41 = vadd.f32 %v1014_v31, %v932_v32  ;;  %v1135_v43 = vsel %vm453_vm1, %v1133_v45, %v1134_v36  ;;  %s2392_s23 = scalar_lea.vmem [#allocation2], %s1446_s14 }
  0xa6   : > { %v1054_v42 = vadd.f32 %v1016_v38, %v933_v35  ;;  %v1137_v44 = vsel %vm453_vm1, %v1134_v36, %v1136_v48  ;;  %v280_v21 = vmul.f32 %v1922_v4, %v262_v37  ;;  %v281_v30 = vmul.f32 %v1922_v4, %v263_v39  ;;  %s1352_s11 = sshll.u32 %s2392_s23, 4  ;;  %s1353_s11 = int_to_ptr.vmem [resolvable:$true] %s1352_s11 }
  0xa7   : > { %v304_v25 = vmul.f32 %v1924_v5, %v262_v37  ;;  %v305_v46 = vmul.f32 %v1924_v5, %v263_v39  ;;  %v1174_v26 = vadd.f32 %v1135_v43, %v1053_v41  ;;  %v306_v50 = vmul.f32 %v1924_v5, %v264_v40  ;;  %v2379_v43 = vld [vmem:[%s2474_s3] ss:$0 sm:$0xff] }
  0xa8   : > { %v1175_v49 = vadd.f32 %v1137_v44, %v1054_v42  ;;  %v426_v51 = vmul.f32 %v1928_v6, %v262_v37  ;;  %v427_v54 = vmul.f32 %v1928_v6, %v263_v39  ;;  %v428_v55 = vmul.f32 %v1928_v6, %v264_v40 }
  0xa9   : > { %v367_v52 = vrot.slane %v304_v25, 1  ;;  %v368_v53 = vrot.slane %v305_v46, 1  ;;  %v370_v57 = vrot.slane %v306_v50, 1  ;;  %v577_v58 = vunpack.c.l.bf16 %v1476_v47 }
  0xaa   : > { %v1185_v56 = vpack.c.bf16 %v1175_v49, %v1174_v26  ;;  %v489_v4 = vrot.slane %v426_v51, 2  ;;  %v490_v61 = vrot.slane %v427_v54, 2  ;;  %v492_v24 = vrot.slane %v428_v55, 2 }
  0xab   : > { %v369_v59 = vsel %vm331_vm0, %v367_v52, %v368_v53  ;;  %v593_v5 = vmul.f32 %v2165_v60, %v1930_v7  ;;  %v371_v62 = vsel %vm331_vm0, %v368_v53, %v370_v57  ;;  %v594_v6 = vmul.f32 %v2168_v63, %v1930_v7 }
  0xac   : > { %1289 = vmatmul.bf16.gmra.mxu2 %v1185_v56  ;;  %v402_v27 = vadd.f32 %v369_v59, %v280_v21  ;;  %v633_v0 = vmul.f32 %v2165_v60, %v1932_v8  ;;  %v403_v1 = vadd.f32 %v371_v62, %v281_v30  ;;  %v491_v12 = vsel %vm453_vm1, %v489_v4, %v490_v61 }
  0xad   : > { %v493_v2 = vsel %vm453_vm1, %v490_v61, %v492_v24  ;;  %v634_v3 = vmul.f32 %v2168_v63, %v1932_v8  ;;  %v635_v15 = vmul.f32 %v1932_v8, %v577_v58  ;;  %v754_v18 = vmul.f32 %v2165_v60, %v1934_v9 }
  0xae   : > { %v524_v11 = vadd.f32 %v491_v12, %v402_v27  ;;  %v695_v16 = vrot.slane %v633_v0, 1  ;;  %v525_v7 = vadd.f32 %v493_v2, %v403_v1  ;;  %v755_v20 = vmul.f32 %v2168_v63, %v1934_v9 }
  0xaf   : > { %v696_v19 = vrot.slane %v634_v3, 1  ;;  %v756_v22 = vmul.f32 %v1934_v9, %v577_v58  ;;  %v698_v29 = vrot.slane %v635_v15, 1  ;;  %v816_v32 = vrot.slane %v754_v18, 2 }
  0xb0   : > { %v609_v28 = vadd.f32 %v593_v5, %v524_v11  ;;  %v902_v33 = vunpack.c.l.bf16 %v1500_v10  ;;  %v610_v34 = vadd.f32 %v594_v6, %v525_v7  ;;  %v817_v45 = vrot.slane %v755_v20, 2 }
  0xb1   : > { %v697_v8 = vsel %vm331_vm0, %v695_v16, %v696_v19  ;;  %v819_v35 = vrot.slane %v756_v22, 2  ;;  %v699_v60 = vsel %vm331_vm0, %v696_v19, %v698_v29  ;;  %v903_v48 = vunpack.c.h.bf16 %v1500_v10 }
  0xb2   : > { %v730_v36 = vadd.f32 %v697_v8, %v609_v28  ;;  %v904_v37 = vunpack.c.l.bf16 %v1502_v23  ;;  %v731_v31 = vadd.f32 %v699_v60, %v610_v34  ;;  %v818_v63 = vsel %vm453_vm1, %v816_v32, %v817_v45 }
  0xb3   : > { %v820_v9 = vsel %vm453_vm1, %v817_v45, %v819_v35  ;;  %v920_v38 = vmul.f32 %v1939_v13, %v902_v33  ;;  %v921_v40 = vmul.f32 %v1939_v13, %v903_v48  ;;  %v960_v41 = vmul.f32 %v1941_v14, %v902_v33 }
  0xb4   : > { %v851_v39 = vadd.f32 %v818_v63, %v730_v36  ;;  %v961_v42 = vmul.f32 %v1941_v14, %v903_v48  ;;  %v852_v44 = vadd.f32 %v820_v9, %v731_v31  ;;  %v962_v21 = vmul.f32 %v1941_v14, %v904_v37 }
  0xb5   : > { %v1081_v30 = vmul.f32 %v2327_v17, %v902_v33  ;;  %v1082_v25 = vmul.f32 %v2327_v17, %v903_v48  ;;  %v1022_v47 = vrot.slane %v960_v41, 1  ;;  %v1083_v13 = vmul.f32 %v2327_v17, %v904_v37  ;;  %v1265_v53 = vpop.f32.mrf.mxu0 }
  0xb6   : > { %v936_v46 = vadd.f32 %v920_v38, %v851_v39  ;;  %v1023_v26 = vrot.slane %v961_v42, 1  ;;  %v937_v49 = vadd.f32 %v921_v40, %v852_v44  ;;  %v1025_v50 = vrot.slane %v962_v21, 1 }
  0xb7   : > { %v1143_v51 = vrot.slane %v1081_v30, 2  ;;  %v1144_v52 = vrot.slane %v1082_v25, 2  ;;  %v1146_v55 = vrot.slane %v1083_v13, 2  ;;  %v1266_v14 = vadd.f32 %v2379_v43, %v1265_v53 }
  0xb8   : > { %v1024_v54 = vsel %vm331_vm0, %v1022_v47, %v1023_v26  ;;  %v1026_v56 = vsel %vm331_vm0, %v1023_v26, %v1025_v50 }
  0xb9   : > { %v1057_v57 = vadd.f32 %v1024_v54, %v936_v46  ;;  %v1145_v4 = vsel %vm453_vm1, %v1143_v51, %v1144_v52  ;;  %v1058_v58 = vadd.f32 %v1026_v56, %v937_v49  ;;  %v1147_v17 = vsel %vm453_vm1, %v1144_v52, %v1146_v55 }
  0xba   : > { %v1305_v59 = vmax.f32 %v1266_v14, 0.0 }
  0xbb   : > { %v1178_v61 = vadd.f32 %v1145_v4, %v1057_v57  ;;  %v1179_v24 = vadd.f32 %v1147_v17, %v1058_v58 }
  0xbc   : > { %1321 = vst [vmem:[%s2392_s23] sm:$0xff] %v1305_v59 }
  0xbd   : > { %v1187_v5 = vpack.c.bf16 %v1179_v24, %v1178_v61  ;;  %v1267_v0 = vpop.f32.mrf.mxu0 }
  0xbe   : > { %v1268_v12 = vadd.f32 %v2379_v43, %v1267_v0 }
  0xbf   : > { %1299 = vmatmul.bf16.gmra.mxu3 %v1187_v5 }
  0xc0   : > { %v1306_v3 = vmax.f32 %v1268_v12, 0.0 }
  0xc2   : > { %1322 = vst [vmem:[%s2392_s23 + $0x8] sm:$0xff] %v1306_v3 }
  0xc7   : > { %v1275_v62 = vpop.f32.mrf.mxu1 }
  0xc8   : > { %v1276_v27 = vadd.f32 %v2379_v43, %v1275_v62 }
  0xca   : > { %v1309_v6 = vmax.f32 %v1276_v27, 0.0 }
  0xcc   : > { %1325 = vst [vmem:[%s2392_s23 + $0x20] sm:$0xff] %v1309_v6 }
  0xcf   : > { %v1277_v1 = vpop.f32.mrf.mxu1 }
  0xd0   : > { %v1278_v2 = vadd.f32 %v2379_v43, %v1277_v1 }
  0xd2   : > { %v1310_v10 = vmax.f32 %v1278_v2, 0.0 }
  0xd4   : > { %1326 = vst [vmem:[%s2392_s23 + $0x28] sm:$0xff] %v1310_v10 }
  0xe1   : > { %v1285_v11 = vpop.f32.mrf.mxu2 }
  0xe2   : > { %v1286_v15 = vadd.f32 %v2379_v43, %v1285_v11 }
  0xe4   : > { %v1313_v16 = vmax.f32 %v1286_v15, 0.0 }
  0xe6   : > { %1329 = vst [vmem:[%s2392_s23 + $0x40] sm:$0xff] %v1313_v16 }
  0xe9   : > { %v1287_v18 = vpop.f32.mrf.mxu2 }
  0xea   : > { %v1288_v7 = vadd.f32 %v2379_v43, %v1287_v18 }
  0xec   : > { %v1314_v19 = vmax.f32 %v1288_v7, 0.0 }
  0xee   : > { %1330 = vst [vmem:[%s2392_s23 + $0x48] sm:$0xff] %v1314_v19 }
  0xf4   : > { %v1295_v20 = vpop.f32.mrf.mxu3 }
  0xf5   : > { %v1296_v22 = vadd.f32 %v2379_v43, %v1295_v20 }
  0xf7   : > { %v1317_v23 = vmax.f32 %v1296_v22, 0.0 }
  0xf9   : > { %1333 = vst [vmem:[%s2392_s23 + $0x60] sm:$0xff] %v1317_v23 }
  0xfc   : > { %v1297_v28 = vpop.f32.mrf.mxu3 }
  0xfd   : > { %v1298_v29 = vadd.f32 %v2379_v43, %v1297_v28 }
  0xff   : > { %v1318_v32 = vmax.f32 %v1298_v29, 0.0 }
 0x101   : > { %1334 = vst [vmem:[%s2392_s23 + $0x68] sm:$0xff] %v1318_v32 }
 0x102   : > { %v1270_v33 = vpop.f32.mrf.mxu0 }
 0x103   : > { %v1271_v34 = vadd.f32 %v2379_v43, %v1270_v33 }
 0x105   : > { %v1307_v8 = vmax.f32 %v1271_v34, 0.0 }
 0x107   : > { %1323 = vst [vmem:[%s2392_s23 + $0x10] sm:$0xff] %v1307_v8 }
 0x10a   : > { %v1272_v36 = vpop.f32.mrf.mxu0 }
 0x10b   : > { %v1273_v37 = vadd.f32 %v2379_v43, %v1272_v36 }
 0x10d   : > { %v1308_v63 = vmax.f32 %v1273_v37, 0.0 }
 0x10f   : > { %1324 = vst [vmem:[%s2392_s23 + $0x18] sm:$0xff] %v1308_v63 }
 0x115   : > { %v1280_v45 = vpop.f32.mrf.mxu1 }
 0x116   : > { %v1281_v35 = vadd.f32 %v2379_v43, %v1280_v45 }
 0x118   : > { %v1311_v60 = vmax.f32 %v1281_v35, 0.0 }
 0x11a   : > { %1327 = vst [vmem:[%s2392_s23 + $0x30] sm:$0xff] %v1311_v60 }
 0x11d   : > { %v1282_v48 = vpop.f32.mrf.mxu1 }
 0x11e   : > { %v1283_v31 = vadd.f32 %v2379_v43, %v1282_v48 }
 0x120   : > { %v1312_v9 = vmax.f32 %v1283_v31, 0.0 }
 0x122   : > { %1328 = vst [vmem:[%s2392_s23 + $0x38] sm:$0xff] %v1312_v9 }
 0x12f   : > { %v1290_v38 = vpop.f32.mrf.mxu2 }
 0x130   : > { %v1291_v39 = vadd.f32 %v2379_v43, %v1290_v38 }
 0x132   : > { %v1315_v40 = vmax.f32 %v1291_v39, 0.0 }
 0x134   : > { %1331 = vst [vmem:[%s2392_s23 + $0x50] sm:$0xff] %v1315_v40 }
 0x137   : > { %v1292_v41 = vpop.f32.mrf.mxu2 }
 0x138   : > { %v1293_v42 = vadd.f32 %v2379_v43, %v1292_v41 }
 0x13a   : > { %v1316_v44 = vmax.f32 %v1293_v42, 0.0 }
 0x13c   : > { %1332 = vst [vmem:[%s2392_s23 + $0x58] sm:$0xff] %v1316_v44 }
 0x142   : > { %v1300_v21 = vpop.f32.mrf.mxu3 }
 0x143   : > { %v1301_v30 = vadd.f32 %v2379_v43, %v1300_v21 }
 0x145   : > { %v1319_v25 = vmax.f32 %v1301_v30, 0.0 }
 0x147   : > { %1335 = vst [vmem:[%s2392_s23 + $0x70] sm:$0xff] %v1319_v25 }
 0x14a   : > { %v1302_v46 = vpop.f32.mrf.mxu3 }
 0x14b   : > { %v1303_v47 = vadd.f32 %v2379_v43, %v1302_v46 }
 0x14d   : > { %v1320_v26 = vmax.f32 %v1303_v47, 0.0 }
 0x14f   : > { %1336 = vst [vmem:[%s2392_s23 + $0x78] sm:$0xff] %v1320_v26 }
 0x150   : > { %1737 = shalt.err (!%p1734_p6)
}
 0x151   : > { %s1806_s9 = smov 128   ;;  %s1807_s23 = smov 8  }
 0x152   : > { %1634 = dma.vmem_to_hbm [thread:$0]  (%p1884_p3), %s1353_s11, 2048, %s1355_s12, %s1338_s18, %s1806_s9, %s1806_s9, %s1807_s23  }
 0x153 PF: > { %p1640_p7 = scmp.ge.s32.totalorder %s1804_s22, 2  ;;  %s1369_s6 = sand.u32 1, %s1776_s15  }
 0x154   : > { %s1370_s8 = scalar_lea.sflag [#allocation3], %s1369_s6 }
 0x155   : > { %p1637_p9 = pnand %p1640_p7, %p1893_p8 }
 0x157   : > { %p1638_p10 = pneg %p1637_p9 }
 0x159   : > { %1771 = dma.done.wait (%p1638_p10), %s1370_s8, 2048  }
 0x15a   : > { %1773 = vsyncadd (%p1638_p10), %s1370_s8, 4294965248  ;;  %s17_s22 = sadd.s32 1, %s1804_s22   ;;  %s2478_s15 = smov %s1780_s16 }
 0x15b   : > { %p14_p11 = scmp.ge.s32.totalorder %s17_s22, 6   ;;  %s2479_s16 = smov %s1784_s17 }
 0x15c   : > { %s2480_s17 = smov %s1902_s7  ;;  %s2481_s18 = smov %s1796_s20 }
 0x15d   : > { %s2482_s19 = smov %s1800_s21  ;;  %s2483_s20 = smov %s2486_s25 }
 0x15e   : > { %s2484_s21 = smov %s2490_s26  ;;  %16 = sbr.rel (!%p14_p11) target bundleno = 5 (0x5), region = 74 }
 0x163   :  { %1376 = vsyncpa [#allocation3], 1 }
 0x164   :  { %1378 = vsyncpa [#allocation3 + $0x1], 1 }

</bundles_post_ra>
